<compile_context>
chip_gen: v5e
topology: v5e:2x2
jax: 0.10.0
libtpu: 0.0.40
codegen_flags: <defaults>
</compile_context>

<pallas_src>
import functools

import jax
import jax.numpy as jnp
from jax import lax
from jax.experimental import pallas as pl
from jax.experimental.pallas import tpu as pltpu

nChans = 3
KH, KW = 3, 3
PAD_H, PAD_W = 1, 3


def _conv_relu_sum_kernel(w_ref, mask_ref, x_ref, o_ref, *, cout, cin, wp, tap_len):
    """One grid step = `nb` whole padded images.

    w_ref   : [cout, cin*KH*KW] f32, SMEM   (81 scalar weight reads)
    mask_ref: [1, tap_len]      f32, VMEM   (1.0 at valid output positions)
    x_ref   : [cin, nb, S]      f32, VMEM   (padded images, spatial flattened on lanes)
    o_ref   : [1, 128]          f32, VMEM   (per-step partial sum in lane 0)
    """
    nb = x_ref.shape[1]
    accs = [jnp.zeros((nb, tap_len), jnp.float32) for _ in range(cout)]

    for ci in range(cin):
        plane = x_ref[ci]                                   # [nb, S]
        for kh in range(KH):
            for kw in range(KW):
                delta = kh * wp + kw                        # static lane shift
                tap = plane[:, delta:delta + tap_len]       # [nb, tap_len]
                kidx = (ci * KH + kh) * KW + kw             # matches OIHW flatten
                for co in range(cout):
                    accs[co] = accs[co] + w_ref[co, kidx] * tap

    mask = mask_ref[...]                                    # [1, tap_len]
    total = jnp.float32(0.0)
    for co in range(cout):
        # |relu(x)| == relu(x); halo positions are zeroed by the mask.
        total = total + jnp.sum(jnp.maximum(accs[co], 0.0) * mask)

    lane = lax.broadcasted_iota(jnp.int32, (1, 128), 1)
    o_ref[...] = jnp.where(lane == 0, total, jnp.float32(0.0))


def _pick_batch_tile(n, per_image_bytes):
    """Batch-tile size: multiple of 8, ~1 MiB of image data, >=4 grid steps if possible."""
    if n <= 8:
        return n                                            # full (small) batch, one step
    target = 1 << 20
    nb = (target // max(per_image_bytes, 1)) // 8 * 8
    nb = max(8, min(nb, pl.cdiv(n, 8) * 8))
    # keep >= 4 grid steps when the batch allows it (v7x dual-TC parallel split)
    while nb > 8 and pl.cdiv(n, nb) < 4:
        nb -= 8
    return nb


def module0_forward(inputs, conv_weight):
    """inputs: tuple; inputs[0] is the NCHW image batch.
    conv_weight: [Cout, Cin, KH, KW] (PyTorch OIHW), no bias."""
    x = inputs[0].astype(jnp.float32)
    n, c, h, w = x.shape
    hp, wp = h + 2 * PAD_H, w + 2 * PAD_W
    ho, wo = hp - KH + 1, wp - KW + 1                       # = h, w + 4
    s = hp * wp
    tap_len = s - ((KH - 1) * wp + (KW - 1))                # last valid flat index + 1
    cout, cin = conv_weight.shape[0], conv_weight.shape[1]
    k = cin * KH * KW

    # Padded image, channel-major, per-image flattened spatial on the lane axis.
    xp = jnp.pad(x, ((0, 0), (0, 0), (PAD_H, PAD_H), (PAD_W, PAD_W)))
    xflat = xp.transpose(1, 0, 2, 3).reshape(cin, n, s)     # [Cin, N, S]

    # Batch tiling (zero-padded images contribute conv=0 -> relu=0 -> sum 0).
    nb = _pick_batch_tile(n, cin * s * 4)
    n_pad = pl.cdiv(n, nb) * nb
    if n_pad != n:
        xflat = jnp.pad(xflat, ((0, 0), (0, n_pad - n), (0, 0)))
    num_tiles = n_pad // nb

    # Valid-output mask over the flattened padded grid (halo columns -> 0).
    sidx = jnp.arange(tap_len, dtype=jnp.int32)
    mask = ((sidx % wp) < wo).astype(jnp.float32).reshape(1, tap_len)

    # OIHW -> [Cout, Cin*KH*KW]; row order (ci, kh, kw) matches kidx in-kernel.
    w2d = conv_weight.reshape(cout, k).astype(jnp.float32)

    kernel = functools.partial(
        _conv_relu_sum_kernel, cout=cout, cin=cin, wp=wp, tap_len=tap_len)

    flops = 2 * cout * k * n_pad * tap_len
    bytes_accessed = 4 * (xflat.size + mask.size + w2d.size + 128 * num_tiles)

    partial = pl.pallas_call(
        kernel,
        out_shape=jax.ShapeDtypeStruct((1, 128 * num_tiles), jnp.float32),
        grid=(num_tiles,),
        in_specs=[
            pl.BlockSpec(memory_space=pltpu.MemorySpace.SMEM),   # weights (scalars)
            pl.BlockSpec((1, tap_len), lambda i: (0, 0)),        # mask (resident)
            pl.BlockSpec((cin, nb, s), lambda i: (0, i, 0)),     # image batch tile
        ],
        out_specs=pl.BlockSpec((1, 128), lambda i: (0, i)),      # lane-dense partials
        compiler_params=pltpu.CompilerParams(
            dimension_semantics=("parallel",),                   # megacore split
        ),
        cost_estimate=pl.CostEstimate(
            flops=flops, transcendentals=0, bytes_accessed=bytes_accessed),
    )(w2d, mask, xflat)

    # Exact hoisted 0.1 scale; tiny final reduce over num_tiles*128 floats.
    return 0.1 * jnp.sum(partial)


def _reference(inputs, conv_weight):
    x = inputs[0].astype(jnp.float32)
    y = lax.conv_general_dilated(
        x, conv_weight.astype(jnp.float32),
        window_strides=(1, 1),
        padding=((PAD_H, PAD_H), (PAD_W, PAD_W)),
        dimension_numbers=("NCHW", "OIHW", "NCHW"))
    y = jnp.maximum(y, 0.0)
    return jnp.sum(0.1 * jnp.abs(y))


if __name__ == "__main__":
    key = jax.random.PRNGKey(0)
    k_x, k_w = jax.random.split(key)

    # Small shapes consistent with the module: NCHW image batch, nChans=3.
    N, C, H, W = 2, nChans, 16, 16
    x = jax.random.normal(k_x, (N, C, H, W), dtype=jnp.float32)
    conv_w = 0.1 * jax.random.normal(k_w, (nChans, nChans, KH, KW), dtype=jnp.float32)

    out = jax.block_until_ready(jax.jit(module0_forward)((x,), conv_w))
    ref = jax.block_until_ready(_reference((x,), conv_w))
    assert jnp.allclose(out, ref, rtol=1e-4, atol=1e-3), (out, ref)

    print("KERNEL_OK")
</pallas_src>

<mosaic_0001>
module attributes {stable_mosaic.version = 11 : i64} {
  func.func @_conv_relu_sum_kernel(%arg0: i32, %arg1: memref<3x27xf32, #tpu.memory_space<smem>>, %arg2: memref<1x350xf32, #tpu.memory_space<vmem>>, %arg3: memref<3x2x396xf32, #tpu.memory_space<vmem>>, %arg4: memref<1x128xf32, #tpu.memory_space<vmem>>) attributes {dimension_semantics = [#tpu.dimension_semantics<parallel>], iteration_bounds = array<i64: 1>, scalar_prefetch = 0 : i64, scratch_operands = 0 : i64, tpu.core_type = #tpu.core_type<tc>, window_params = [{transform_indices = @transform_0, window_bounds = array<i64: 3, 27>}, {pipeline_mode = #tpu.pipeline_mode<synchronous>, transform_indices = @transform_1, window_bounds = array<i64: 1, 350>}, {transform_indices = @transform_2, window_bounds = array<i64: 3, 2, 396>}, {transform_indices = @transform_3, window_bounds = array<i64: 1, 128>}]} {
    %cst = arith.constant 0.000000e+00 : f32
    %0 = vector.broadcast %cst : f32 to vector<2x350xf32>
    %cst_0 = arith.constant 0.000000e+00 : f32
    %1 = vector.broadcast %cst_0 : f32 to vector<2x350xf32>
    %cst_1 = arith.constant 0.000000e+00 : f32
    %2 = vector.broadcast %cst_1 : f32 to vector<2x350xf32>
    %c0 = arith.constant 0 : index
    %c0_2 = arith.constant 0 : index
    %c0_3 = arith.constant 0 : index
    %3 = vector.load %arg3[%c0, %c0_2, %c0_3] : memref<3x2x396xf32, #tpu.memory_space<vmem>>, vector<1x2x396xf32>
    %4 = vector.shape_cast %3 : vector<1x2x396xf32> to vector<2x396xf32>
    %5 = vector.extract_strided_slice %4 {offsets = [0, 0], sizes = [2, 350], strides = [1, 1]} : vector<2x396xf32> to vector<2x350xf32>
    %c0_4 = arith.constant 0 : index
    %c0_5 = arith.constant 0 : index
    %6 = memref.load %arg1[%c0_4, %c0_5] : memref<3x27xf32, #tpu.memory_space<smem>>
    %7 = vector.broadcast %6 : f32 to vector<2x350xf32>
    %8 = arith.mulf %7, %5 : vector<2x350xf32>
    %9 = arith.addf %0, %8 : vector<2x350xf32>
    %c1 = arith.constant 1 : index
    %c0_6 = arith.constant 0 : index
    %10 = memref.load %arg1[%c1, %c0_6] : memref<3x27xf32, #tpu.memory_space<smem>>
    %11 = vector.broadcast %10 : f32 to vector<2x350xf32>
    %12 = arith.mulf %11, %5 : vector<2x350xf32>
    %13 = arith.addf %1, %12 : vector<2x350xf32>
    %c2 = arith.constant 2 : index
    %c0_7 = arith.constant 0 : index
    %14 = memref.load %arg1[%c2, %c0_7] : memref<3x27xf32, #tpu.memory_space<smem>>
    %15 = vector.broadcast %14 : f32 to vector<2x350xf32>
    %16 = arith.mulf %15, %5 : vector<2x350xf32>
    %17 = arith.addf %2, %16 : vector<2x350xf32>
    %18 = vector.extract_strided_slice %4 {offsets = [0, 1], sizes = [2, 350], strides = [1, 1]} : vector<2x396xf32> to vector<2x350xf32>
    %c0_8 = arith.constant 0 : index
    %c1_9 = arith.constant 1 : index
    %19 = memref.load %arg1[%c0_8, %c1_9] : memref<3x27xf32, #tpu.memory_space<smem>>
    %20 = vector.broadcast %19 : f32 to vector<2x350xf32>
    %21 = arith.mulf %20, %18 : vector<2x350xf32>
    %22 = arith.addf %9, %21 : vector<2x350xf32>
    %c1_10 = arith.constant 1 : index
    %c1_11 = arith.constant 1 : index
    %23 = memref.load %arg1[%c1_10, %c1_11] : memref<3x27xf32, #tpu.memory_space<smem>>
    %24 = vector.broadcast %23 : f32 to vector<2x350xf32>
    %25 = arith.mulf %24, %18 : vector<2x350xf32>
    %26 = arith.addf %13, %25 : vector<2x350xf32>
    %c2_12 = arith.constant 2 : index
    %c1_13 = arith.constant 1 : index
    %27 = memref.load %arg1[%c2_12, %c1_13] : memref<3x27xf32, #tpu.memory_space<smem>>
    %28 = vector.broadcast %27 : f32 to vector<2x350xf32>
    %29 = arith.mulf %28, %18 : vector<2x350xf32>
    %30 = arith.addf %17, %29 : vector<2x350xf32>
    %31 = vector.extract_strided_slice %4 {offsets = [0, 2], sizes = [2, 350], strides = [1, 1]} : vector<2x396xf32> to vector<2x350xf32>
    %c0_14 = arith.constant 0 : index
    %c2_15 = arith.constant 2 : index
    %32 = memref.load %arg1[%c0_14, %c2_15] : memref<3x27xf32, #tpu.memory_space<smem>>
    %33 = vector.broadcast %32 : f32 to vector<2x350xf32>
    %34 = arith.mulf %33, %31 : vector<2x350xf32>
    %35 = arith.addf %22, %34 : vector<2x350xf32>
    %c1_16 = arith.constant 1 : index
    %c2_17 = arith.constant 2 : index
    %36 = memref.load %arg1[%c1_16, %c2_17] : memref<3x27xf32, #tpu.memory_space<smem>>
    %37 = vector.broadcast %36 : f32 to vector<2x350xf32>
    %38 = arith.mulf %37, %31 : vector<2x350xf32>
    %39 = arith.addf %26, %38 : vector<2x350xf32>
    %c2_18 = arith.constant 2 : index
    %c2_19 = arith.constant 2 : index
    %40 = memref.load %arg1[%c2_18, %c2_19] : memref<3x27xf32, #tpu.memory_space<smem>>
    %41 = vector.broadcast %40 : f32 to vector<2x350xf32>
    %42 = arith.mulf %41, %31 : vector<2x350xf32>
    %43 = arith.addf %30, %42 : vector<2x350xf32>
    %44 = vector.extract_strided_slice %4 {offsets = [0, 22], sizes = [2, 350], strides = [1, 1]} : vector<2x396xf32> to vector<2x350xf32>
    %c0_20 = arith.constant 0 : index
    %c3 = arith.constant 3 : index
    %45 = memref.load %arg1[%c0_20, %c3] : memref<3x27xf32, #tpu.memory_space<smem>>
    %46 = vector.broadcast %45 : f32 to vector<2x350xf32>
    %47 = arith.mulf %46, %44 : vector<2x350xf32>
    %48 = arith.addf %35, %47 : vector<2x350xf32>
    %c1_21 = arith.constant 1 : index
    %c3_22 = arith.constant 3 : index
    %49 = memref.load %arg1[%c1_21, %c3_22] : memref<3x27xf32, #tpu.memory_space<smem>>
    %50 = vector.broadcast %49 : f32 to vector<2x350xf32>
    %51 = arith.mulf %50, %44 : vector<2x350xf32>
    %52 = arith.addf %39, %51 : vector<2x350xf32>
    %c2_23 = arith.constant 2 : index
    %c3_24 = arith.constant 3 : index
    %53 = memref.load %arg1[%c2_23, %c3_24] : memref<3x27xf32, #tpu.memory_space<smem>>
    %54 = vector.broadcast %53 : f32 to vector<2x350xf32>
    %55 = arith.mulf %54, %44 : vector<2x350xf32>
    %56 = arith.addf %43, %55 : vector<2x350xf32>
    %57 = vector.extract_strided_slice %4 {offsets = [0, 23], sizes = [2, 350], strides = [1, 1]} : vector<2x396xf32> to vector<2x350xf32>
    %c0_25 = arith.constant 0 : index
    %c4 = arith.constant 4 : index
    %58 = memref.load %arg1[%c0_25, %c4] : memref<3x27xf32, #tpu.memory_space<smem>>
    %59 = vector.broadcast %58 : f32 to vector<2x350xf32>
    %60 = arith.mulf %59, %57 : vector<2x350xf32>
    %61 = arith.addf %48, %60 : vector<2x350xf32>
    %c1_26 = arith.constant 1 : index
    %c4_27 = arith.constant 4 : index
    %62 = memref.load %arg1[%c1_26, %c4_27] : memref<3x27xf32, #tpu.memory_space<smem>>
    %63 = vector.broadcast %62 : f32 to vector<2x350xf32>
    %64 = arith.mulf %63, %57 : vector<2x350xf32>
    %65 = arith.addf %52, %64 : vector<2x350xf32>
    %c2_28 = arith.constant 2 : index
    %c4_29 = arith.constant 4 : index
    %66 = memref.load %arg1[%c2_28, %c4_29] : memref<3x27xf32, #tpu.memory_space<smem>>
    %67 = vector.broadcast %66 : f32 to vector<2x350xf32>
    %68 = arith.mulf %67, %57 : vector<2x350xf32>
    %69 = arith.addf %56, %68 : vector<2x350xf32>
    %70 = vector.extract_strided_slice %4 {offsets = [0, 24], sizes = [2, 350], strides = [1, 1]} : vector<2x396xf32> to vector<2x350xf32>
    %c0_30 = arith.constant 0 : index
    %c5 = arith.constant 5 : index
    %71 = memref.load %arg1[%c0_30, %c5] : memref<3x27xf32, #tpu.memory_space<smem>>
    %72 = vector.broadcast %71 : f32 to vector<2x350xf32>
    %73 = arith.mulf %72, %70 : vector<2x350xf32>
    %74 = arith.addf %61, %73 : vector<2x350xf32>
    %c1_31 = arith.constant 1 : index
    %c5_32 = arith.constant 5 : index
    %75 = memref.load %arg1[%c1_31, %c5_32] : memref<3x27xf32, #tpu.memory_space<smem>>
    %76 = vector.broadcast %75 : f32 to vector<2x350xf32>
    %77 = arith.mulf %76, %70 : vector<2x350xf32>
    %78 = arith.addf %65, %77 : vector<2x350xf32>
    %c2_33 = arith.constant 2 : index
    %c5_34 = arith.constant 5 : index
    %79 = memref.load %arg1[%c2_33, %c5_34] : memref<3x27xf32, #tpu.memory_space<smem>>
    %80 = vector.broadcast %79 : f32 to vector<2x350xf32>
    %81 = arith.mulf %80, %70 : vector<2x350xf32>
    %82 = arith.addf %69, %81 : vector<2x350xf32>
    %83 = vector.extract_strided_slice %4 {offsets = [0, 44], sizes = [2, 350], strides = [1, 1]} : vector<2x396xf32> to vector<2x350xf32>
    %c0_35 = arith.constant 0 : index
    %c6 = arith.constant 6 : index
    %84 = memref.load %arg1[%c0_35, %c6] : memref<3x27xf32, #tpu.memory_space<smem>>
    %85 = vector.broadcast %84 : f32 to vector<2x350xf32>
    %86 = arith.mulf %85, %83 : vector<2x350xf32>
    %87 = arith.addf %74, %86 : vector<2x350xf32>
    %c1_36 = arith.constant 1 : index
    %c6_37 = arith.constant 6 : index
    %88 = memref.load %arg1[%c1_36, %c6_37] : memref<3x27xf32, #tpu.memory_space<smem>>
    %89 = vector.broadcast %88 : f32 to vector<2x350xf32>
    %90 = arith.mulf %89, %83 : vector<2x350xf32>
    %91 = arith.addf %78, %90 : vector<2x350xf32>
    %c2_38 = arith.constant 2 : index
    %c6_39 = arith.constant 6 : index
    %92 = memref.load %arg1[%c2_38, %c6_39] : memref<3x27xf32, #tpu.memory_space<smem>>
    %93 = vector.broadcast %92 : f32 to vector<2x350xf32>
    %94 = arith.mulf %93, %83 : vector<2x350xf32>
    %95 = arith.addf %82, %94 : vector<2x350xf32>
    %96 = vector.extract_strided_slice %4 {offsets = [0, 45], sizes = [2, 350], strides = [1, 1]} : vector<2x396xf32> to vector<2x350xf32>
    %c0_40 = arith.constant 0 : index
    %c7 = arith.constant 7 : index
    %97 = memref.load %arg1[%c0_40, %c7] : memref<3x27xf32, #tpu.memory_space<smem>>
    %98 = vector.broadcast %97 : f32 to vector<2x350xf32>
    %99 = arith.mulf %98, %96 : vector<2x350xf32>
    %100 = arith.addf %87, %99 : vector<2x350xf32>
    %c1_41 = arith.constant 1 : index
    %c7_42 = arith.constant 7 : index
    %101 = memref.load %arg1[%c1_41, %c7_42] : memref<3x27xf32, #tpu.memory_space<smem>>
    %102 = vector.broadcast %101 : f32 to vector<2x350xf32>
    %103 = arith.mulf %102, %96 : vector<2x350xf32>
    %104 = arith.addf %91, %103 : vector<2x350xf32>
    %c2_43 = arith.constant 2 : index
    %c7_44 = arith.constant 7 : index
    %105 = memref.load %arg1[%c2_43, %c7_44] : memref<3x27xf32, #tpu.memory_space<smem>>
    %106 = vector.broadcast %105 : f32 to vector<2x350xf32>
    %107 = arith.mulf %106, %96 : vector<2x350xf32>
    %108 = arith.addf %95, %107 : vector<2x350xf32>
    %109 = vector.extract_strided_slice %4 {offsets = [0, 46], sizes = [2, 350], strides = [1, 1]} : vector<2x396xf32> to vector<2x350xf32>
    %c0_45 = arith.constant 0 : index
    %c8 = arith.constant 8 : index
    %110 = memref.load %arg1[%c0_45, %c8] : memref<3x27xf32, #tpu.memory_space<smem>>
    %111 = vector.broadcast %110 : f32 to vector<2x350xf32>
    %112 = arith.mulf %111, %109 : vector<2x350xf32>
    %113 = arith.addf %100, %112 : vector<2x350xf32>
    %c1_46 = arith.constant 1 : index
    %c8_47 = arith.constant 8 : index
    %114 = memref.load %arg1[%c1_46, %c8_47] : memref<3x27xf32, #tpu.memory_space<smem>>
    %115 = vector.broadcast %114 : f32 to vector<2x350xf32>
    %116 = arith.mulf %115, %109 : vector<2x350xf32>
    %117 = arith.addf %104, %116 : vector<2x350xf32>
    %c2_48 = arith.constant 2 : index
    %c8_49 = arith.constant 8 : index
    %118 = memref.load %arg1[%c2_48, %c8_49] : memref<3x27xf32, #tpu.memory_space<smem>>
    %119 = vector.broadcast %118 : f32 to vector<2x350xf32>
    %120 = arith.mulf %119, %109 : vector<2x350xf32>
    %121 = arith.addf %108, %120 : vector<2x350xf32>
    %c1_50 = arith.constant 1 : index
    %c0_51 = arith.constant 0 : index
    %c0_52 = arith.constant 0 : index
    %122 = vector.load %arg3[%c1_50, %c0_51, %c0_52] : memref<3x2x396xf32, #tpu.memory_space<vmem>>, vector<1x2x396xf32>
    %123 = vector.shape_cast %122 : vector<1x2x396xf32> to vector<2x396xf32>
    %124 = vector.extract_strided_slice %123 {offsets = [0, 0], sizes = [2, 350], strides = [1, 1]} : vector<2x396xf32> to vector<2x350xf32>
    %c0_53 = arith.constant 0 : index
    %c9 = arith.constant 9 : index
    %125 = memref.load %arg1[%c0_53, %c9] : memref<3x27xf32, #tpu.memory_space<smem>>
    %126 = vector.broadcast %125 : f32 to vector<2x350xf32>
    %127 = arith.mulf %126, %124 : vector<2x350xf32>
    %128 = arith.addf %113, %127 : vector<2x350xf32>
    %c1_54 = arith.constant 1 : index
    %c9_55 = arith.constant 9 : index
    %129 = memref.load %arg1[%c1_54, %c9_55] : memref<3x27xf32, #tpu.memory_space<smem>>
    %130 = vector.broadcast %129 : f32 to vector<2x350xf32>
    %131 = arith.mulf %130, %124 : vector<2x350xf32>
    %132 = arith.addf %117, %131 : vector<2x350xf32>
    %c2_56 = arith.constant 2 : index
    %c9_57 = arith.constant 9 : index
    %133 = memref.load %arg1[%c2_56, %c9_57] : memref<3x27xf32, #tpu.memory_space<smem>>
    %134 = vector.broadcast %133 : f32 to vector<2x350xf32>
    %135 = arith.mulf %134, %124 : vector<2x350xf32>
    %136 = arith.addf %121, %135 : vector<2x350xf32>
    %137 = vector.extract_strided_slice %123 {offsets = [0, 1], sizes = [2, 350], strides = [1, 1]} : vector<2x396xf32> to vector<2x350xf32>
    %c0_58 = arith.constant 0 : index
    %c10 = arith.constant 10 : index
    %138 = memref.load %arg1[%c0_58, %c10] : memref<3x27xf32, #tpu.memory_space<smem>>
    %139 = vector.broadcast %138 : f32 to vector<2x350xf32>
    %140 = arith.mulf %139, %137 : vector<2x350xf32>
    %141 = arith.addf %128, %140 : vector<2x350xf32>
    %c1_59 = arith.constant 1 : index
    %c10_60 = arith.constant 10 : index
    %142 = memref.load %arg1[%c1_59, %c10_60] : memref<3x27xf32, #tpu.memory_space<smem>>
    %143 = vector.broadcast %142 : f32 to vector<2x350xf32>
    %144 = arith.mulf %143, %137 : vector<2x350xf32>
    %145 = arith.addf %132, %144 : vector<2x350xf32>
    %c2_61 = arith.constant 2 : index
    %c10_62 = arith.constant 10 : index
    %146 = memref.load %arg1[%c2_61, %c10_62] : memref<3x27xf32, #tpu.memory_space<smem>>
    %147 = vector.broadcast %146 : f32 to vector<2x350xf32>
    %148 = arith.mulf %147, %137 : vector<2x350xf32>
    %149 = arith.addf %136, %148 : vector<2x350xf32>
    %150 = vector.extract_strided_slice %123 {offsets = [0, 2], sizes = [2, 350], strides = [1, 1]} : vector<2x396xf32> to vector<2x350xf32>
    %c0_63 = arith.constant 0 : index
    %c11 = arith.constant 11 : index
    %151 = memref.load %arg1[%c0_63, %c11] : memref<3x27xf32, #tpu.memory_space<smem>>
    %152 = vector.broadcast %151 : f32 to vector<2x350xf32>
    %153 = arith.mulf %152, %150 : vector<2x350xf32>
    %154 = arith.addf %141, %153 : vector<2x350xf32>
    %c1_64 = arith.constant 1 : index
    %c11_65 = arith.constant 11 : index
    %155 = memref.load %arg1[%c1_64, %c11_65] : memref<3x27xf32, #tpu.memory_space<smem>>
    %156 = vector.broadcast %155 : f32 to vector<2x350xf32>
    %157 = arith.mulf %156, %150 : vector<2x350xf32>
    %158 = arith.addf %145, %157 : vector<2x350xf32>
    %c2_66 = arith.constant 2 : index
    %c11_67 = arith.constant 11 : index
    %159 = memref.load %arg1[%c2_66, %c11_67] : memref<3x27xf32, #tpu.memory_space<smem>>
    %160 = vector.broadcast %159 : f32 to vector<2x350xf32>
    %161 = arith.mulf %160, %150 : vector<2x350xf32>
    %162 = arith.addf %149, %161 : vector<2x350xf32>
    %163 = vector.extract_strided_slice %123 {offsets = [0, 22], sizes = [2, 350], strides = [1, 1]} : vector<2x396xf32> to vector<2x350xf32>
    %c0_68 = arith.constant 0 : index
    %c12 = arith.constant 12 : index
    %164 = memref.load %arg1[%c0_68, %c12] : memref<3x27xf32, #tpu.memory_space<smem>>
    %165 = vector.broadcast %164 : f32 to vector<2x350xf32>
    %166 = arith.mulf %165, %163 : vector<2x350xf32>
    %167 = arith.addf %154, %166 : vector<2x350xf32>
    %c1_69 = arith.constant 1 : index
    %c12_70 = arith.constant 12 : index
    %168 = memref.load %arg1[%c1_69, %c12_70] : memref<3x27xf32, #tpu.memory_space<smem>>
    %169 = vector.broadcast %168 : f32 to vector<2x350xf32>
    %170 = arith.mulf %169, %163 : vector<2x350xf32>
    %171 = arith.addf %158, %170 : vector<2x350xf32>
    %c2_71 = arith.constant 2 : index
    %c12_72 = arith.constant 12 : index
    %172 = memref.load %arg1[%c2_71, %c12_72] : memref<3x27xf32, #tpu.memory_space<smem>>
    %173 = vector.broadcast %172 : f32 to vector<2x350xf32>
    %174 = arith.mulf %173, %163 : vector<2x350xf32>
    %175 = arith.addf %162, %174 : vector<2x350xf32>
    %176 = vector.extract_strided_slice %123 {offsets = [0, 23], sizes = [2, 350], strides = [1, 1]} : vector<2x396xf32> to vector<2x350xf32>
    %c0_73 = arith.constant 0 : index
    %c13 = arith.constant 13 : index
    %177 = memref.load %arg1[%c0_73, %c13] : memref<3x27xf32, #tpu.memory_space<smem>>
    %178 = vector.broadcast %177 : f32 to vector<2x350xf32>
    %179 = arith.mulf %178, %176 : vector<2x350xf32>
    %180 = arith.addf %167, %179 : vector<2x350xf32>
    %c1_74 = arith.constant 1 : index
    %c13_75 = arith.constant 13 : index
    %181 = memref.load %arg1[%c1_74, %c13_75] : memref<3x27xf32, #tpu.memory_space<smem>>
    %182 = vector.broadcast %181 : f32 to vector<2x350xf32>
    %183 = arith.mulf %182, %176 : vector<2x350xf32>
    %184 = arith.addf %171, %183 : vector<2x350xf32>
    %c2_76 = arith.constant 2 : index
    %c13_77 = arith.constant 13 : index
    %185 = memref.load %arg1[%c2_76, %c13_77] : memref<3x27xf32, #tpu.memory_space<smem>>
    %186 = vector.broadcast %185 : f32 to vector<2x350xf32>
    %187 = arith.mulf %186, %176 : vector<2x350xf32>
    %188 = arith.addf %175, %187 : vector<2x350xf32>
    %189 = vector.extract_strided_slice %123 {offsets = [0, 24], sizes = [2, 350], strides = [1, 1]} : vector<2x396xf32> to vector<2x350xf32>
    %c0_78 = arith.constant 0 : index
    %c14 = arith.constant 14 : index
    %190 = memref.load %arg1[%c0_78, %c14] : memref<3x27xf32, #tpu.memory_space<smem>>
    %191 = vector.broadcast %190 : f32 to vector<2x350xf32>
    %192 = arith.mulf %191, %189 : vector<2x350xf32>
    %193 = arith.addf %180, %192 : vector<2x350xf32>
    %c1_79 = arith.constant 1 : index
    %c14_80 = arith.constant 14 : index
    %194 = memref.load %arg1[%c1_79, %c14_80] : memref<3x27xf32, #tpu.memory_space<smem>>
    %195 = vector.broadcast %194 : f32 to vector<2x350xf32>
    %196 = arith.mulf %195, %189 : vector<2x350xf32>
    %197 = arith.addf %184, %196 : vector<2x350xf32>
    %c2_81 = arith.constant 2 : index
    %c14_82 = arith.constant 14 : index
    %198 = memref.load %arg1[%c2_81, %c14_82] : memref<3x27xf32, #tpu.memory_space<smem>>
    %199 = vector.broadcast %198 : f32 to vector<2x350xf32>
    %200 = arith.mulf %199, %189 : vector<2x350xf32>
    %201 = arith.addf %188, %200 : vector<2x350xf32>
    %202 = vector.extract_strided_slice %123 {offsets = [0, 44], sizes = [2, 350], strides = [1, 1]} : vector<2x396xf32> to vector<2x350xf32>
    %c0_83 = arith.constant 0 : index
    %c15 = arith.constant 15 : index
    %203 = memref.load %arg1[%c0_83, %c15] : memref<3x27xf32, #tpu.memory_space<smem>>
    %204 = vector.broadcast %203 : f32 to vector<2x350xf32>
    %205 = arith.mulf %204, %202 : vector<2x350xf32>
    %206 = arith.addf %193, %205 : vector<2x350xf32>
    %c1_84 = arith.constant 1 : index
    %c15_85 = arith.constant 15 : index
    %207 = memref.load %arg1[%c1_84, %c15_85] : memref<3x27xf32, #tpu.memory_space<smem>>
    %208 = vector.broadcast %207 : f32 to vector<2x350xf32>
    %209 = arith.mulf %208, %202 : vector<2x350xf32>
    %210 = arith.addf %197, %209 : vector<2x350xf32>
    %c2_86 = arith.constant 2 : index
    %c15_87 = arith.constant 15 : index
    %211 = memref.load %arg1[%c2_86, %c15_87] : memref<3x27xf32, #tpu.memory_space<smem>>
    %212 = vector.broadcast %211 : f32 to vector<2x350xf32>
    %213 = arith.mulf %212, %202 : vector<2x350xf32>
    %214 = arith.addf %201, %213 : vector<2x350xf32>
    %215 = vector.extract_strided_slice %123 {offsets = [0, 45], sizes = [2, 350], strides = [1, 1]} : vector<2x396xf32> to vector<2x350xf32>
    %c0_88 = arith.constant 0 : index
    %c16 = arith.constant 16 : index
    %216 = memref.load %arg1[%c0_88, %c16] : memref<3x27xf32, #tpu.memory_space<smem>>
    %217 = vector.broadcast %216 : f32 to vector<2x350xf32>
    %218 = arith.mulf %217, %215 : vector<2x350xf32>
    %219 = arith.addf %206, %218 : vector<2x350xf32>
    %c1_89 = arith.constant 1 : index
    %c16_90 = arith.constant 16 : index
    %220 = memref.load %arg1[%c1_89, %c16_90] : memref<3x27xf32, #tpu.memory_space<smem>>
    %221 = vector.broadcast %220 : f32 to vector<2x350xf32>
    %222 = arith.mulf %221, %215 : vector<2x350xf32>
    %223 = arith.addf %210, %222 : vector<2x350xf32>
    %c2_91 = arith.constant 2 : index
    %c16_92 = arith.constant 16 : index
    %224 = memref.load %arg1[%c2_91, %c16_92] : memref<3x27xf32, #tpu.memory_space<smem>>
    %225 = vector.broadcast %224 : f32 to vector<2x350xf32>
    %226 = arith.mulf %225, %215 : vector<2x350xf32>
    %227 = arith.addf %214, %226 : vector<2x350xf32>
    %228 = vector.extract_strided_slice %123 {offsets = [0, 46], sizes = [2, 350], strides = [1, 1]} : vector<2x396xf32> to vector<2x350xf32>
    %c0_93 = arith.constant 0 : index
    %c17 = arith.constant 17 : index
    %229 = memref.load %arg1[%c0_93, %c17] : memref<3x27xf32, #tpu.memory_space<smem>>
    %230 = vector.broadcast %229 : f32 to vector<2x350xf32>
    %231 = arith.mulf %230, %228 : vector<2x350xf32>
    %232 = arith.addf %219, %231 : vector<2x350xf32>
    %c1_94 = arith.constant 1 : index
    %c17_95 = arith.constant 17 : index
    %233 = memref.load %arg1[%c1_94, %c17_95] : memref<3x27xf32, #tpu.memory_space<smem>>
    %234 = vector.broadcast %233 : f32 to vector<2x350xf32>
    %235 = arith.mulf %234, %228 : vector<2x350xf32>
    %236 = arith.addf %223, %235 : vector<2x350xf32>
    %c2_96 = arith.constant 2 : index
    %c17_97 = arith.constant 17 : index
    %237 = memref.load %arg1[%c2_96, %c17_97] : memref<3x27xf32, #tpu.memory_space<smem>>
    %238 = vector.broadcast %237 : f32 to vector<2x350xf32>
    %239 = arith.mulf %238, %228 : vector<2x350xf32>
    %240 = arith.addf %227, %239 : vector<2x350xf32>
    %c2_98 = arith.constant 2 : index
    %c0_99 = arith.constant 0 : index
    %c0_100 = arith.constant 0 : index
    %241 = vector.load %arg3[%c2_98, %c0_99, %c0_100] : memref<3x2x396xf32, #tpu.memory_space<vmem>>, vector<1x2x396xf32>
    %242 = vector.shape_cast %241 : vector<1x2x396xf32> to vector<2x396xf32>
    %243 = vector.extract_strided_slice %242 {offsets = [0, 0], sizes = [2, 350], strides = [1, 1]} : vector<2x396xf32> to vector<2x350xf32>
    %c0_101 = arith.constant 0 : index
    %c18 = arith.constant 18 : index
    %244 = memref.load %arg1[%c0_101, %c18] : memref<3x27xf32, #tpu.memory_space<smem>>
    %245 = vector.broadcast %244 : f32 to vector<2x350xf32>
    %246 = arith.mulf %245, %243 : vector<2x350xf32>
    %247 = arith.addf %232, %246 : vector<2x350xf32>
    %c1_102 = arith.constant 1 : index
    %c18_103 = arith.constant 18 : index
    %248 = memref.load %arg1[%c1_102, %c18_103] : memref<3x27xf32, #tpu.memory_space<smem>>
    %249 = vector.broadcast %248 : f32 to vector<2x350xf32>
    %250 = arith.mulf %249, %243 : vector<2x350xf32>
    %251 = arith.addf %236, %250 : vector<2x350xf32>
    %c2_104 = arith.constant 2 : index
    %c18_105 = arith.constant 18 : index
    %252 = memref.load %arg1[%c2_104, %c18_105] : memref<3x27xf32, #tpu.memory_space<smem>>
    %253 = vector.broadcast %252 : f32 to vector<2x350xf32>
    %254 = arith.mulf %253, %243 : vector<2x350xf32>
    %255 = arith.addf %240, %254 : vector<2x350xf32>
    %256 = vector.extract_strided_slice %242 {offsets = [0, 1], sizes = [2, 350], strides = [1, 1]} : vector<2x396xf32> to vector<2x350xf32>
    %c0_106 = arith.constant 0 : index
    %c19 = arith.constant 19 : index
    %257 = memref.load %arg1[%c0_106, %c19] : memref<3x27xf32, #tpu.memory_space<smem>>
    %258 = vector.broadcast %257 : f32 to vector<2x350xf32>
    %259 = arith.mulf %258, %256 : vector<2x350xf32>
    %260 = arith.addf %247, %259 : vector<2x350xf32>
    %c1_107 = arith.constant 1 : index
    %c19_108 = arith.constant 19 : index
    %261 = memref.load %arg1[%c1_107, %c19_108] : memref<3x27xf32, #tpu.memory_space<smem>>
    %262 = vector.broadcast %261 : f32 to vector<2x350xf32>
    %263 = arith.mulf %262, %256 : vector<2x350xf32>
    %264 = arith.addf %251, %263 : vector<2x350xf32>
    %c2_109 = arith.constant 2 : index
    %c19_110 = arith.constant 19 : index
    %265 = memref.load %arg1[%c2_109, %c19_110] : memref<3x27xf32, #tpu.memory_space<smem>>
    %266 = vector.broadcast %265 : f32 to vector<2x350xf32>
    %267 = arith.mulf %266, %256 : vector<2x350xf32>
    %268 = arith.addf %255, %267 : vector<2x350xf32>
    %269 = vector.extract_strided_slice %242 {offsets = [0, 2], sizes = [2, 350], strides = [1, 1]} : vector<2x396xf32> to vector<2x350xf32>
    %c0_111 = arith.constant 0 : index
    %c20 = arith.constant 20 : index
    %270 = memref.load %arg1[%c0_111, %c20] : memref<3x27xf32, #tpu.memory_space<smem>>
    %271 = vector.broadcast %270 : f32 to vector<2x350xf32>
    %272 = arith.mulf %271, %269 : vector<2x350xf32>
    %273 = arith.addf %260, %272 : vector<2x350xf32>
    %c1_112 = arith.constant 1 : index
    %c20_113 = arith.constant 20 : index
    %274 = memref.load %arg1[%c1_112, %c20_113] : memref<3x27xf32, #tpu.memory_space<smem>>
    %275 = vector.broadcast %274 : f32 to vector<2x350xf32>
    %276 = arith.mulf %275, %269 : vector<2x350xf32>
    %277 = arith.addf %264, %276 : vector<2x350xf32>
    %c2_114 = arith.constant 2 : index
    %c20_115 = arith.constant 20 : index
    %278 = memref.load %arg1[%c2_114, %c20_115] : memref<3x27xf32, #tpu.memory_space<smem>>
    %279 = vector.broadcast %278 : f32 to vector<2x350xf32>
    %280 = arith.mulf %279, %269 : vector<2x350xf32>
    %281 = arith.addf %268, %280 : vector<2x350xf32>
    %282 = vector.extract_strided_slice %242 {offsets = [0, 22], sizes = [2, 350], strides = [1, 1]} : vector<2x396xf32> to vector<2x350xf32>
    %c0_116 = arith.constant 0 : index
    %c21 = arith.constant 21 : index
    %283 = memref.load %arg1[%c0_116, %c21] : memref<3x27xf32, #tpu.memory_space<smem>>
    %284 = vector.broadcast %283 : f32 to vector<2x350xf32>
    %285 = arith.mulf %284, %282 : vector<2x350xf32>
    %286 = arith.addf %273, %285 : vector<2x350xf32>
    %c1_117 = arith.constant 1 : index
    %c21_118 = arith.constant 21 : index
    %287 = memref.load %arg1[%c1_117, %c21_118] : memref<3x27xf32, #tpu.memory_space<smem>>
    %288 = vector.broadcast %287 : f32 to vector<2x350xf32>
    %289 = arith.mulf %288, %282 : vector<2x350xf32>
    %290 = arith.addf %277, %289 : vector<2x350xf32>
    %c2_119 = arith.constant 2 : index
    %c21_120 = arith.constant 21 : index
    %291 = memref.load %arg1[%c2_119, %c21_120] : memref<3x27xf32, #tpu.memory_space<smem>>
    %292 = vector.broadcast %291 : f32 to vector<2x350xf32>
    %293 = arith.mulf %292, %282 : vector<2x350xf32>
    %294 = arith.addf %281, %293 : vector<2x350xf32>
    %295 = vector.extract_strided_slice %242 {offsets = [0, 23], sizes = [2, 350], strides = [1, 1]} : vector<2x396xf32> to vector<2x350xf32>
    %c0_121 = arith.constant 0 : index
    %c22 = arith.constant 22 : index
    %296 = memref.load %arg1[%c0_121, %c22] : memref<3x27xf32, #tpu.memory_space<smem>>
    %297 = vector.broadcast %296 : f32 to vector<2x350xf32>
    %298 = arith.mulf %297, %295 : vector<2x350xf32>
    %299 = arith.addf %286, %298 : vector<2x350xf32>
    %c1_122 = arith.constant 1 : index
    %c22_123 = arith.constant 22 : index
    %300 = memref.load %arg1[%c1_122, %c22_123] : memref<3x27xf32, #tpu.memory_space<smem>>
    %301 = vector.broadcast %300 : f32 to vector<2x350xf32>
    %302 = arith.mulf %301, %295 : vector<2x350xf32>
    %303 = arith.addf %290, %302 : vector<2x350xf32>
    %c2_124 = arith.constant 2 : index
    %c22_125 = arith.constant 22 : index
    %304 = memref.load %arg1[%c2_124, %c22_125] : memref<3x27xf32, #tpu.memory_space<smem>>
    %305 = vector.broadcast %304 : f32 to vector<2x350xf32>
    %306 = arith.mulf %305, %295 : vector<2x350xf32>
    %307 = arith.addf %294, %306 : vector<2x350xf32>
    %308 = vector.extract_strided_slice %242 {offsets = [0, 24], sizes = [2, 350], strides = [1, 1]} : vector<2x396xf32> to vector<2x350xf32>
    %c0_126 = arith.constant 0 : index
    %c23 = arith.constant 23 : index
    %309 = memref.load %arg1[%c0_126, %c23] : memref<3x27xf32, #tpu.memory_space<smem>>
    %310 = vector.broadcast %309 : f32 to vector<2x350xf32>
    %311 = arith.mulf %310, %308 : vector<2x350xf32>
    %312 = arith.addf %299, %311 : vector<2x350xf32>
    %c1_127 = arith.constant 1 : index
    %c23_128 = arith.constant 23 : index
    %313 = memref.load %arg1[%c1_127, %c23_128] : memref<3x27xf32, #tpu.memory_space<smem>>
    %314 = vector.broadcast %313 : f32 to vector<2x350xf32>
    %315 = arith.mulf %314, %308 : vector<2x350xf32>
    %316 = arith.addf %303, %315 : vector<2x350xf32>
    %c2_129 = arith.constant 2 : index
    %c23_130 = arith.constant 23 : index
    %317 = memref.load %arg1[%c2_129, %c23_130] : memref<3x27xf32, #tpu.memory_space<smem>>
    %318 = vector.broadcast %317 : f32 to vector<2x350xf32>
    %319 = arith.mulf %318, %308 : vector<2x350xf32>
    %320 = arith.addf %307, %319 : vector<2x350xf32>
    %321 = vector.extract_strided_slice %242 {offsets = [0, 44], sizes = [2, 350], strides = [1, 1]} : vector<2x396xf32> to vector<2x350xf32>
    %c0_131 = arith.constant 0 : index
    %c24 = arith.constant 24 : index
    %322 = memref.load %arg1[%c0_131, %c24] : memref<3x27xf32, #tpu.memory_space<smem>>
    %323 = vector.broadcast %322 : f32 to vector<2x350xf32>
    %324 = arith.mulf %323, %321 : vector<2x350xf32>
    %325 = arith.addf %312, %324 : vector<2x350xf32>
    %c1_132 = arith.constant 1 : index
    %c24_133 = arith.constant 24 : index
    %326 = memref.load %arg1[%c1_132, %c24_133] : memref<3x27xf32, #tpu.memory_space<smem>>
    %327 = vector.broadcast %326 : f32 to vector<2x350xf32>
    %328 = arith.mulf %327, %321 : vector<2x350xf32>
    %329 = arith.addf %316, %328 : vector<2x350xf32>
    %c2_134 = arith.constant 2 : index
    %c24_135 = arith.constant 24 : index
    %330 = memref.load %arg1[%c2_134, %c24_135] : memref<3x27xf32, #tpu.memory_space<smem>>
    %331 = vector.broadcast %330 : f32 to vector<2x350xf32>
    %332 = arith.mulf %331, %321 : vector<2x350xf32>
    %333 = arith.addf %320, %332 : vector<2x350xf32>
    %334 = vector.extract_strided_slice %242 {offsets = [0, 45], sizes = [2, 350], strides = [1, 1]} : vector<2x396xf32> to vector<2x350xf32>
    %c0_136 = arith.constant 0 : index
    %c25 = arith.constant 25 : index
    %335 = memref.load %arg1[%c0_136, %c25] : memref<3x27xf32, #tpu.memory_space<smem>>
    %336 = vector.broadcast %335 : f32 to vector<2x350xf32>
    %337 = arith.mulf %336, %334 : vector<2x350xf32>
    %338 = arith.addf %325, %337 : vector<2x350xf32>
    %c1_137 = arith.constant 1 : index
    %c25_138 = arith.constant 25 : index
    %339 = memref.load %arg1[%c1_137, %c25_138] : memref<3x27xf32, #tpu.memory_space<smem>>
    %340 = vector.broadcast %339 : f32 to vector<2x350xf32>
    %341 = arith.mulf %340, %334 : vector<2x350xf32>
    %342 = arith.addf %329, %341 : vector<2x350xf32>
    %c2_139 = arith.constant 2 : index
    %c25_140 = arith.constant 25 : index
    %343 = memref.load %arg1[%c2_139, %c25_140] : memref<3x27xf32, #tpu.memory_space<smem>>
    %344 = vector.broadcast %343 : f32 to vector<2x350xf32>
    %345 = arith.mulf %344, %334 : vector<2x350xf32>
    %346 = arith.addf %333, %345 : vector<2x350xf32>
    %347 = vector.extract_strided_slice %242 {offsets = [0, 46], sizes = [2, 350], strides = [1, 1]} : vector<2x396xf32> to vector<2x350xf32>
    %c0_141 = arith.constant 0 : index
    %c26 = arith.constant 26 : index
    %348 = memref.load %arg1[%c0_141, %c26] : memref<3x27xf32, #tpu.memory_space<smem>>
    %349 = vector.broadcast %348 : f32 to vector<2x350xf32>
    %350 = arith.mulf %349, %347 : vector<2x350xf32>
    %351 = arith.addf %338, %350 : vector<2x350xf32>
    %c1_142 = arith.constant 1 : index
    %c26_143 = arith.constant 26 : index
    %352 = memref.load %arg1[%c1_142, %c26_143] : memref<3x27xf32, #tpu.memory_space<smem>>
    %353 = vector.broadcast %352 : f32 to vector<2x350xf32>
    %354 = arith.mulf %353, %347 : vector<2x350xf32>
    %355 = arith.addf %342, %354 : vector<2x350xf32>
    %c2_144 = arith.constant 2 : index
    %c26_145 = arith.constant 26 : index
    %356 = memref.load %arg1[%c2_144, %c26_145] : memref<3x27xf32, #tpu.memory_space<smem>>
    %357 = vector.broadcast %356 : f32 to vector<2x350xf32>
    %358 = arith.mulf %357, %347 : vector<2x350xf32>
    %359 = arith.addf %346, %358 : vector<2x350xf32>
    %c0_146 = arith.constant 0 : index
    %c0_147 = arith.constant 0 : index
    %360 = vector.load %arg2[%c0_146, %c0_147] : memref<1x350xf32, #tpu.memory_space<vmem>>, vector<1x350xf32>
    %cst_148 = arith.constant 0.000000e+00 : f32
    %361 = vector.broadcast %cst_148 : f32 to vector<2x350xf32>
    %362 = arith.maximumf %351, %361 : vector<2x350xf32>
    %363 = vector.broadcast %360 : vector<1x350xf32> to vector<2x350xf32>
    %364 = arith.mulf %362, %363 : vector<2x350xf32>
    %365 = vector.shape_cast %364 : vector<2x350xf32> to vector<1x2x350xf32>
    %cst_149 = arith.constant dense<0.000000e+00> : vector<1xf32>
    %366 = vector.multi_reduction <add>, %365, %cst_149 [1, 2] : vector<1x2x350xf32> to vector<1xf32>
    %367 = vector.shape_cast %366 : vector<1xf32> to vector<1x1x1xf32>
    %368 = vector.extract %367[0, 0, 0] : f32 from vector<1x1x1xf32>
    %cst_150 = arith.constant 0.000000e+00 : f32
    %369 = arith.addf %cst_150, %368 : f32
    %cst_151 = arith.constant 0.000000e+00 : f32
    %370 = vector.broadcast %cst_151 : f32 to vector<2x350xf32>
    %371 = arith.maximumf %355, %370 : vector<2x350xf32>
    %372 = vector.broadcast %360 : vector<1x350xf32> to vector<2x350xf32>
    %373 = arith.mulf %371, %372 : vector<2x350xf32>
    %374 = vector.shape_cast %373 : vector<2x350xf32> to vector<1x2x350xf32>
    %cst_152 = arith.constant dense<0.000000e+00> : vector<1xf32>
    %375 = vector.multi_reduction <add>, %374, %cst_152 [1, 2] : vector<1x2x350xf32> to vector<1xf32>
    %376 = vector.shape_cast %375 : vector<1xf32> to vector<1x1x1xf32>
    %377 = vector.extract %376[0, 0, 0] : f32 from vector<1x1x1xf32>
    %378 = arith.addf %369, %377 : f32
    %cst_153 = arith.constant 0.000000e+00 : f32
    %379 = vector.broadcast %cst_153 : f32 to vector<2x350xf32>
    %380 = arith.maximumf %359, %379 : vector<2x350xf32>
    %381 = vector.broadcast %360 : vector<1x350xf32> to vector<2x350xf32>
    %382 = arith.mulf %380, %381 : vector<2x350xf32>
    %383 = vector.shape_cast %382 : vector<2x350xf32> to vector<1x2x350xf32>
    %cst_154 = arith.constant dense<0.000000e+00> : vector<1xf32>
    %384 = vector.multi_reduction <add>, %383, %cst_154 [1, 2] : vector<1x2x350xf32> to vector<1xf32>
    %385 = vector.shape_cast %384 : vector<1xf32> to vector<1x1x1xf32>
    %386 = vector.extract %385[0, 0, 0] : f32 from vector<1x1x1xf32>
    %387 = arith.addf %378, %386 : f32
    %388 = tpu.iota {dimensions = array<i32: 1>} : vector<1x128xi32>
    %c0_i32 = arith.constant 0 : i32
    %389 = vector.broadcast %c0_i32 : i32 to vector<1x128xi32>
    %390 = arith.cmpi eq, %388, %389 : vector<1x128xi32>
    %cst_155 = arith.constant 0.000000e+00 : f32
    %391 = vector.broadcast %387 : f32 to vector<1x128xf32>
    %392 = vector.broadcast %cst_155 : f32 to vector<1x128xf32>
    %393 = arith.select %390, %391, %392 : vector<1x128xi1>, vector<1x128xf32>
    %c0_156 = arith.constant 0 : index
    %c0_157 = arith.constant 0 : index
    %394 = vector.load %arg4[%c0_156, %c0_157] : memref<1x128xf32, #tpu.memory_space<vmem>>, vector<1x128xf32>
    tpu.vector_store %arg4[%c0_156, %c0_157], %393 {strides = array<i32>} : memref<1x128xf32, #tpu.memory_space<vmem>>, vector<1x128xf32>,
    return
  }
  func.func @transform_0(%arg0: i32) -> (i32, i32) {
    %c0_i32 = arith.constant 0 : i32
    %c0_i32_0 = arith.constant 0 : i32
    %c0_i32_1 = arith.constant 0 : i32
    return %c0_i32, %c0_i32_0 : i32, i32
  }
  func.func @transform_1(%arg0: i32) -> (i32, i32) {
    %c0_i32 = arith.constant 0 : i32
    %c0_i32_0 = arith.constant 0 : i32
    %c0_i32_1 = arith.constant 0 : i32
    return %c0_i32, %c0_i32_0 : i32, i32
  }
  func.func @transform_2(%arg0: i32) -> (i32, i32, i32) {
    %c0_i32 = arith.constant 0 : i32
    %c0_i32_0 = arith.constant 0 : i32
    %c0_i32_1 = arith.constant 0 : i32
    return %c0_i32, %arg0, %c0_i32_0 : i32, i32, i32
  }
  func.func @transform_3(%arg0: i32) -> (i32, i32) {
    %c0_i32 = arith.constant 0 : i32
    %c0_i32_0 = arith.constant 0 : i32
    return %c0_i32, %arg0 : i32, i32
  }
}

</mosaic_0001>

<bundles_post_ra>
// kernel: module0_forward.1
= control target key start
LH: loop header
LB: loop body
LE: loop exit
PB: predicated region body
PF: predicated region fallthrough
CT: control target
= control target key end

     0   :  { %8 = vsyncpa [#allocation3], 0  ;;  %s1006_s15 = smov [#allocation2]   ;;  %s1460_s0 = inlined_call_operand.vmem [shape: f32[3,27], index: 0, kind: input, shape index: {}]   ;;  %s1461_s1 = inlined_call_operand.vmem [shape: f32[1,350], index: 1, kind: input, shape index: {}]   ;;  %s1462_s2 = inlined_call_operand.vmem [shape: f32[3,2,396], index: 2, kind: input, shape index: {}]   ;;  %s1463_s3 = inlined_call_operand.vmem [shape: f32[1,128], index: 3, kind: output, shape index: {}]  }
   0x1   :  { %s14_s14 = sshll.u32 %s1460_s0, 4  ;;  %s15_s14 = int_to_ptr.vmem [resolvable:$true] %s14_s14 }
   0x2   :  { %17 = dma.vmem_to_smem %s15_s14, 64, %s1006_s15, [#allocation3]  }
   0x3   :  { %1004 = dma.done.wait [#allocation3], 64  }
   0x4   :  { %1005 = vsyncadd [#allocation3], 4294967232 }
   0x5   :  { %26 = sfence }
   0x6   :  { %s900_s16 = sld [smem:[#allocation2 + $0x2]]  ;;  %v1041_v0 = vld [vmem:[%s1462_s2] sm:$0xff]  ;;  %s1007_s0 = smov 126   ;;  %v1075_v31 = vld [vmem:[%s1462_s2 + $0x8] sm:$0xff]  ;;  %vm47_vm0 = vcmask 1039360   ;;  %vm78_vm1 = vcmask 1031168  }
   0x7   :  { %s897_s17 = sld [smem:[#allocation2 + $0x1]]  ;;  %s1008_s24 = smov 127   ;;  %vm109_vm2 = vcmask 867328   ;;  %vm140_vm3 = vcmask 859136   ;;  %vm171_vm4 = vcmask 850944   ;;  %vm202_vm5 = vcmask 687104  }
   0x8   :  { %s906_s18 = sld [smem:[#allocation2 + $0x4]]  ;;  %s1009_s26 = smov 105   ;;  %vm264_vm6 = vcmask 670720   ;;  %vm233_vm7 = vcmask 678912   ;;  %vm804_vm8 = vcmask 1041408   ;;  %vm806_vm9 = vcmask 1043456  }
   0x9   :  { %s903_s19 = sld [smem:[#allocation2 + $0x3]]  ;;  %s1010_s29 = smov 106   ;;  %vm821_vm10 = vcmask 762880  }
   0xa   :  { %s898_s22 = sld [smem:[#allocation2 + $0x81]]  ;;  %s1011_s4 = smov 104  }
   0xb   :  { %s909_s23 = sld [smem:[#allocation2 + $0x5]]  ;;  %s1012_s7 = smov 84  }
   0xc   :  { %v72_v1 = vstv %s900_s16  ;;  %s912_s25 = sld [smem:[#allocation2 + $0x6]]  ;;  %s1013_s11 = smov 83  }
   0xd   :  { %v73_v2 = vmul.f32 %v72_v1, %v1041_v0  ;;  %v41_v3 = vstv %s897_s17  ;;  %s901_s27 = sld [smem:[#allocation2 + $0x82]]  ;;  %s1014_s13 = smov 82  }
   0xe   :  { %v42_v4 = vmul.f32 %v41_v3, %v1041_v0  ;;  %v134_v5 = vstv %s906_s18  ;;  %s904_s28 = sld [smem:[#allocation2 + $0x83]] }
   0xf   :  { %75 = vrot.lane.b32.xlu1 %v73_v2, %s1007_s0  ;;  %v135_v6 = vmul.f32 %v134_v5, %v1041_v0  ;;  %v103_v7 = vstv %s903_s19  ;;  %s907_s30 = sld [smem:[#allocation2 + $0x84]] }
  0x10   :  { %44 = vrot.lane.b32.xlu0 %v42_v4, %s1008_s24  ;;  %v52_v8 = vstv %s898_s22  ;;  %v104_v10 = vmul.f32 %v103_v7, %v1041_v0  ;;  %s915_s5 = sld [smem:[#allocation2 + $0x7]] }
  0x11   :  { %137 = vrot.lane.b32.xlu2 %v135_v6, %s1009_s26  ;;  %v165_v9 = vstv %s909_s23  ;;  %v53_v11 = vmul.f32 %v52_v8, %v1041_v0  ;;  %s918_s6 = sld [smem:[#allocation2 + $0x8]] }
  0x12   :  { %v166_v12 = vmul.f32 %v165_v9, %v1041_v0  ;;  %v196_v13 = vstv %s912_s25  ;;  %s910_s8 = sld [smem:[#allocation2 + $0x85]] }
  0x13   :  { %v83_v14 = vstv %s901_s27  ;;  %v197_v16 = vmul.f32 %v196_v13, %v1041_v0  ;;  %s899_s9 = sld [smem:[#allocation2 + $0x101]] }
  0x14   :  { %v114_v15 = vstv %s904_s28  ;;  %v84_v17 = vmul.f32 %v83_v14, %v1041_v0  ;;  %s902_s10 = sld [smem:[#allocation2 + $0x102]] }
  0x15   :  { %v115_v18 = vmul.f32 %v114_v15, %v1041_v0  ;;  %v145_v19 = vstv %s907_s30  ;;  %s925_s12 = sld [smem:[#allocation2 + $0xa]] }
  0x16   :  { %v227_v20 = vstv %s915_s5  ;;  %v146_v22 = vmul.f32 %v145_v19, %v1041_v0  ;;  %s913_s14 = sld [smem:[#allocation2 + $0x86]] }
  0x17   :  { %106 = vrot.lane.b32.xlu1 %v104_v10, %s1010_s29  ;;  %v258_v21 = vstv %s918_s6  ;;  %v228_v23 = vmul.f32 %v227_v20, %v1041_v0  ;;  %s905_s15 = sld [smem:[#allocation2 + $0x103]] }
  0x18   :  { %55 = vrot.lane.b32.xlu0 %v53_v11, %s1008_s24  ;;  %v259_v24 = vmul.f32 %v258_v21, %v1041_v0  ;;  %v176_v25 = vstv %s910_s8  ;;  %s928_s18 = sld [smem:[#allocation2 + $0xb]] }
  0x19   :  { %168 = vrot.lane.b32.xlu2 %v166_v12, %s1011_s4  ;;  %v62_v26 = vstv %s899_s9  ;;  %v177_v28 = vmul.f32 %v176_v25, %v1041_v0  ;;  %s916_s19 = sld [smem:[#allocation2 + $0x87]] }
  0x1a   :  { %v93_v27 = vstv %s902_s10  ;;  %v63_v29 = vmul.f32 %v62_v26, %v1041_v0  ;;  %s908_s20 = sld [smem:[#allocation2 + $0x104]] }
  0x1b   :  { %v94_v30 = vmul.f32 %v93_v27, %v1041_v0  ;;  %v303_v32 = vstv %s925_s12  ;;  %s931_s21 = sld [smem:[#allocation2 + $0xc]] }
  0x1c   :  { %v207_v33 = vstv %s913_s14  ;;  %v304_v35 = vmul.f32 %v1075_v31, %v303_v32  ;;  %s919_s22 = sld [smem:[#allocation2 + $0x88]] }
  0x1d   :  { %v124_v34 = vstv %s905_s15  ;;  %v208_v36 = vmul.f32 %v207_v33, %v1041_v0  ;;  %s911_s23 = sld [smem:[#allocation2 + $0x105]] }
  0x1e   :  { %v125_v37 = vmul.f32 %v124_v34, %v1041_v0  ;;  %v333_v38 = vstv %s928_s18  ;;  %s914_s25 = sld [smem:[#allocation2 + $0x106]] }
  0x1f   :  { %199 = vrot.lane.b32.xlu1 %v197_v16, %s1012_s7  ;;  %v238_v39 = vstv %s916_s19  ;;  %v334_v41 = vmul.f32 %v1075_v31, %v333_v38  ;;  %s934_s27 = sld [smem:[#allocation2 + $0xd]] }
  0x20   :  { %86 = vrot.lane.b32.xlu0 %v84_v17, %s1007_s0  ;;  %v155_v40 = vstv %s908_s20  ;;  %v239_v42 = vmul.f32 %v238_v39, %v1041_v0  ;;  %s926_s28 = sld [smem:[#allocation2 + $0x8a]] }
  0x21   :  { %117 = vrot.lane.b32.xlu2 %v115_v18, %s1010_s29  ;;  %v156_v43 = vmul.f32 %v155_v40, %v1041_v0  ;;  %v363_v44 = vstv %s931_s21  ;;  %s917_s30 = sld [smem:[#allocation2 + $0x107]]  ;;  %v1130_v18 = vld [vmem:[%s1462_s2 + $0x10] sm:$0xff] }
  0x22   :  { %v269_v45 = vstv %s919_s22  ;;  %v364_v47 = vmul.f32 %v1075_v31, %v363_v44  ;;  %s937_s5 = sld [smem:[#allocation2 + $0xe]] }
  0x23   :  { %v186_v46 = vstv %s911_s23  ;;  %v270_v48 = vmul.f32 %v269_v45, %v1041_v0  ;;  %s929_s6 = sld [smem:[#allocation2 + $0x8b]] }
  0x24   :  { %v187_v49 = vmul.f32 %v186_v46, %v1041_v0  ;;  %v217_v50 = vstv %s914_s25  ;;  %s920_s8 = sld [smem:[#allocation2 + $0x108]] }
  0x25   :  { %v393_v51 = vstv %s934_s27  ;;  %v218_v53 = vmul.f32 %v217_v50, %v1041_v0  ;;  %s940_s9 = sld [smem:[#allocation2 + $0xf]] }
  0x26   :  { %v313_v52 = vstv %s926_s28  ;;  %v394_v54 = vmul.f32 %v1075_v31, %v393_v51  ;;  %s932_s10 = sld [smem:[#allocation2 + $0x8c]] }
  0x27   :  { %148 = vrot.lane.b32.xlu1 %v146_v22, %s1009_s26  ;;  %v314_v55 = vmul.f32 %v1075_v31, %v313_v52  ;;  %v248_v56 = vstv %s917_s30  ;;  %s935_s12 = sld [smem:[#allocation2 + $0x8d]] }
  0x28   :  { %230 = vrot.lane.b32.xlu0 %v228_v23, %s1013_s11  ;;  %v423_v57 = vstv %s937_s5  ;;  %v249_v59 = vmul.f32 %v248_v56, %v1041_v0  ;;  %s943_s14 = sld [smem:[#allocation2 + $0x10]] }
  0x29   :  { %261 = vrot.lane.b32.xlu2 %v259_v24, %s1014_s13  ;;  %v343_v58 = vstv %s929_s6  ;;  %v424_v60 = vmul.f32 %v1075_v31, %v423_v57  ;;  %s946_s15 = sld [smem:[#allocation2 + $0x11]] }
  0x2a   :  { %v344_v61 = vmul.f32 %v1075_v31, %v343_v58  ;;  %v279_v62 = vstv %s920_s8  ;;  %s938_s16 = sld [smem:[#allocation2 + $0x8e]] }
  0x2b   :  { %v453_v63 = vstv %s940_s9  ;;  %v280_v2 = vmul.f32 %v279_v62, %v1041_v0  ;;  %s927_s17 = sld [smem:[#allocation2 + $0x10a]] }
  0x2c   :  { %v373_v1 = vstv %s932_s10  ;;  %v454_v3 = vmul.f32 %v1075_v31, %v453_v63  ;;  %s930_s18 = sld [smem:[#allocation2 + $0x10b]] }
  0x2d   :  { %v374_v4 = vmul.f32 %v1075_v31, %v373_v1  ;;  %v403_v5 = vstv %s935_s12  ;;  %s953_s19 = sld [smem:[#allocation2 + $0x13]] }
  0x2e   :  { %v483_v6 = vstv %s943_s14  ;;  %v404_v8 = vmul.f32 %v1075_v31, %v403_v5  ;;  %s941_s20 = sld [smem:[#allocation2 + $0x8f]] }
  0x2f   :  { %179 = vrot.lane.b32.xlu1 %v177_v28, %s1011_s4  ;;  %v513_v7 = vstv %s946_s15  ;;  %v484_v9 = vmul.f32 %v1075_v31, %v483_v6  ;;  %s933_s21 = sld [smem:[#allocation2 + $0x10c]] }
  0x30   :  { %65 = vrot.lane.b32.xlu0 %v63_v29, %s1008_s24  ;;  %v514_v10 = vmul.f32 %v1075_v31, %v513_v7  ;;  %v433_v11 = vstv %s938_s16  ;;  %s956_s25 = sld [smem:[#allocation2 + $0x14]] }
  0x31   :  { %96 = vrot.lane.b32.xlu2 %v94_v30, %s1007_s0  ;;  %v323_v12 = vstv %s927_s17  ;;  %v434_v14 = vmul.f32 %v1075_v31, %v433_v11  ;;  %s944_s27 = sld [smem:[#allocation2 + $0x90]] }
  0x32   :  { %v353_v13 = vstv %s930_s18  ;;  %v324_v16 = vmul.f32 %v1075_v31, %v323_v12  ;;  %s936_s28 = sld [smem:[#allocation2 + $0x10d]] }
  0x33   :  { %v354_v17 = vmul.f32 %v1075_v31, %v353_v13  ;;  %v557_v19 = vstv %s953_s19  ;;  %s28_s2 = sld [smem:[#allocation2]] }
  0x34   :  { %v463_v20 = vstv %s941_s20  ;;  %v558_v22 = vmul.f32 %v1130_v18, %v557_v19  ;;  %s959_s30 = sld [smem:[#allocation2 + $0x15]] }
  0x35   :  { %v383_v21 = vstv %s933_s21  ;;  %v464_v24 = vmul.f32 %v1075_v31, %v463_v20  ;;  %s947_s5 = sld [smem:[#allocation2 + $0x91]] }
  0x36   :  { %v384_v25 = vmul.f32 %v1075_v31, %v383_v21  ;;  %v587_v26 = vstv %s956_s25  ;;  %s939_s6 = sld [smem:[#allocation2 + $0x10e]] }
  0x37   :  { %306 = vrot.lane.b32.xlu1 %v304_v35, %s1008_s24  ;;  %v493_v27 = vstv %s944_s27  ;;  %v588_v29 = vmul.f32 %v1130_v18, %v587_v26  ;;  %s1148_s8 = sld [smem:[#allocation2 + $0x10f]] }
  0x38   :  { %210 = vrot.lane.b32.xlu0 %v208_v36, %s1012_s7  ;;  %v413_v28 = vstv %s936_s28  ;;  %v494_v32 = vmul.f32 %v1075_v31, %v493_v27  ;;  %s1151_s9 = sld [smem:[#allocation2 + $0x16]] }
  0x39   :  { %127 = vrot.lane.b32.xlu2 %v125_v37, %s1010_s29  ;;  %v414_v33 = vmul.f32 %v1075_v31, %v413_v28  ;;  %v29_v34 = vstv %s28_s2  ;;  %s1154_s10 = sld [smem:[#allocation2 + $0x93]] }
  0x3a   :  { %v617_v35 = vstv %s959_s30  ;;  %v30_v39 = vmul.f32 %v29_v34, %v1041_v0  ;;  %s1161_s12 = sld [smem:[#allocation2 + $0x80]] }
  0x3b   :  { %v523_v37 = vstv %s947_s5  ;;  %s1168_s14 = sld [smem:[#allocation2 + $0x110]] }
  0x3c   :  { %v443_v40 = vstv %s939_s6  ;;  %v524_v45 = vmul.f32 %v1075_v31, %v523_v37  ;;  %s1172_s15 = sld [smem:[#allocation2 + $0x17]] }
  0x3d   :  { %v473_v51 = vstv %s1148_s8  ;;  %s1176_s16 = sld [smem:[#allocation2 + $0x94]] }
  0x3e   :  { %v474_v58 = vmul.f32 %v1075_v31, %v473_v51  ;;  %s1194_s17 = sld [smem:[#allocation2 + $0x111]] }
  0x3f   :  { %336 = vrot.lane.b32.xlu1 %v334_v41, %s1007_s0  ;;  %v567_v57 = vstv %s1154_s10  ;;  %s1200_s18 = sld [smem:[#allocation2 + $0x18]] }
  0x40   :  { %241 = vrot.lane.b32.xlu0 %v239_v42, %s1013_s11  ;;  %v33_v1 = vstv %s1161_s12  ;;  %s1203_s19 = sld [smem:[#allocation2 + $0x95]] }
  0x41   :  { %158 = vrot.lane.b32.xlu2 %v156_v43, %s1009_s26  ;;  %v618_v43 = vmul.f32 %v1130_v18, %v617_v35  ;;  %v34_v7 = vmul.f32 %v33_v1, %v1041_v0  ;;  %s1215_s20 = sld [smem:[#allocation2 + $0x100]] }
  0x42   :  { %v677_v13 = vstv %s1172_s15  ;;  %s1219_s21 = sld [smem:[#allocation2 + $0x96]] }
  0x43   :  { %s1224_s22 = sld [smem:[#allocation2 + $0x19]] }
  0x44   :  { %s1227_s23 = sld [smem:[#allocation2 + $0x1a]] }
  0x45   :  { %v707_v34 = vstv %s1200_s18  ;;  %s1232_s25 = sld [smem:[#allocation2 + $0x9]] }
  0x46   :  { %v627_v37 = vstv %s1203_s19  ;;  %s1243_s27 = sld [smem:[#allocation2 + $0x97]] }
  0x47   :  { %366 = vrot.lane.b32.xlu1 %v364_v47, %s1010_s29  ;;  %v444_v47 = vmul.f32 %v1075_v31, %v443_v40  ;;  %s1247_s28 = sld [smem:[#allocation2 + $0x113]] }
  0x48   :  { %272 = vrot.lane.b32.xlu0 %v270_v48, %s1014_s13  ;;  %s1251_s2 = sld [smem:[#allocation2 + $0x114]] }
  0x49   :  { %189 = vrot.lane.b32.xlu2 %v187_v49, %s1011_s4  ;;  %s1268_s30 = sld [smem:[#allocation2 + $0x115]] }
  0x4a   :  { %s1272_s5 = sld [smem:[#allocation2 + $0x98]] }
  0x4b   :  { %s1276_s6 = sld [smem:[#allocation2 + $0x99]] }
  0x4c   :  { %s1287_s8 = sld [smem:[#allocation2 + $0x89]] }
  0x4d   :  { %s1294_s10 = sld [smem:[#allocation2 + $0x116]] }
  0x4e   :  { %s1298_s12 = sld [smem:[#allocation2 + $0x117]] }
  0x4f   :  { %220 = vrot.lane.b32.xlu1 %v218_v53, %s1012_s7  ;;  %v647_v53 = vstv %s1151_s9  ;;  %s1291_s9 = sld [smem:[#allocation2 + $0x9a]] }
  0x50   :  { %396 = vrot.lane.b32.xlu0 %v394_v54, %s1009_s26  ;;  %v648_v62 = vmul.f32 %v1130_v18, %v647_v53 }
  0x51   :  { %316 = vrot.lane.b32.xlu2 %v314_v55, %s1008_s24 }
  0x57   :  { %251 = vrot.lane.b32.xlu1 %v249_v59, %s1013_s11 }
  0x58   :  { %426 = vrot.lane.b32.xlu0 %v424_v60, %s1011_s4 }
  0x59   :  { %346 = vrot.lane.b32.xlu2 %v344_v61, %s1007_s0 }
  0x5f   :  { %282 = vrot.lane.b32.xlu1 %v280_v2, %s1014_s13 }
  0x60   :  { %456 = vrot.lane.b32.xlu0 %v454_v3, %s1012_s7  ;;  %v568_v3 = vmul.f32 %v1130_v18, %v567_v57  ;;  %v767_v57 = vstv %s1227_s23 }
  0x61   :  { %376 = vrot.lane.b32.xlu2 %v374_v4, %s1010_s29 }
  0x67   :  { %406 = vrot.lane.b32.xlu1 %v404_v8, %s1009_s26  ;;  %v503_v8 = vstv %s1168_s14  ;;  %s1316_s14 = sld [smem:[#allocation2 + $0x11a]] }
  0x68   :  { %486 = vrot.lane.b32.xlu0 %v484_v9, %s1013_s11  ;;  %v504_v19 = vmul.f32 %v1075_v31, %v503_v8 }
  0x69   :  { %516 = vrot.lane.b32.xlu2 %v514_v10, %s1014_s13 }
  0x6b   :  { %v1121_v15 = vpop.permute.xlu2 %137 }
  0x6c   :  { %v139_v54 = vrot.slane %v1121_v15, 2 }
  0x6e   :  { %v141_v4 = vsel %vm140_vm3, %v1121_v15, %v139_v54 }
  0x6f   :  { %436 = vrot.lane.b32.xlu1 %v434_v14, %s1011_s4 }
  0x70   :  { %326 = vrot.lane.b32.xlu0 %v324_v16, %s1008_s24  ;;  %v597_v16 = vstv %s1176_s16 }
  0x71   :  { %356 = vrot.lane.b32.xlu2 %v354_v17, %s1007_s0  ;;  %v598_v27 = vmul.f32 %v1130_v18, %v597_v16 }
  0x73   :  { %v1134_v23 = vpop.permute.xlu2 %168 }
  0x74   :  { %v170_v60 = vrot.slane %v1134_v23, 2 }
  0x76   :  { %v172_v6 = vsel %vm171_vm4, %v1134_v23, %v170_v60  ;;  %v678_v23 = vmul.f32 %v1130_v18, %v677_v13 }
  0x77   :  { %560 = vrot.lane.b32.xlu1 %v558_v22, %s1008_s24 }
  0x78   :  { %466 = vrot.lane.b32.xlu0 %v464_v24, %s1012_s7 }
  0x79   :  { %386 = vrot.lane.b32.xlu2 %v384_v25, %s1010_s29 }
  0x7b   :  { %v1142_v30 = vpop.permute.xlu2 %117 }
  0x7c   :  { %v119_v9 = vrot.slane %v1142_v30, 2 }
  0x7e   :  { %v120_v24 = vsel %vm109_vm2, %v1142_v30, %v119_v9 }
  0x7f   :  { %590 = vrot.lane.b32.xlu1 %v588_v29, %s1007_s0 }
  0x80   :  { %496 = vrot.lane.b32.xlu0 %v494_v32, %s1013_s11  ;;  %v533_v32 = vstv %s1194_s17 }
  0x81   :  { %v76_v36 = vpop.permute.xlu1 %75  ;;  %416 = vrot.lane.b32.xlu2 %v414_v33, %s1009_s26 }
  0x82   :  { %v45_v38 = vpop.permute.xlu0 %44  ;;  %v77_v41 = vrot.slane %v76_v36, 2 }
  0x83   :  { %v46_v42 = vrot.slane %v45_v38, 2  ;;  %v1157_v44 = vpop.permute.xlu2 %261 }
  0x84   :  { %v79_v49 = vsel %vm78_vm1, %v76_v36, %v77_v41  ;;  %v263_v33 = vrot.slane %v1157_v44, 2 }
  0x85   :  { %v48_v46 = vsel %vm47_vm0, %v45_v38, %v46_v42  ;;  %v708_v42 = vmul.f32 %v1130_v18, %v707_v34  ;;  %v637_v34 = vstv %s1268_s30 }
  0x86   :  { %v50_v48 = vadd.f32 %v48_v46, %v30_v39  ;;  %v534_v39 = vmul.f32 %v1075_v31, %v533_v32 }
  0x87   :  { %620 = vrot.lane.b32.xlu1 %v618_v43, %s1010_s29  ;;  %v265_v43 = vsel %vm264_vm6, %v1157_v44, %v263_v33  ;;  %v737_v44 = vstv %s1224_s22 }
  0x88   :  { %526 = vrot.lane.b32.xlu0 %v524_v45, %s1014_s13  ;;  %v81_v50 = vadd.f32 %v79_v49, %v50_v48  ;;  %v37_v49 = vstv %s1215_s20 }
  0x89   :  { %v107_v52 = vpop.permute.xlu1 %106  ;;  %446 = vrot.lane.b32.xlu2 %v444_v47, %s1011_s4  ;;  %v628_v47 = vmul.f32 %v1130_v18, %v627_v37 }
  0x8a   :  { %v108_v55 = vrot.slane %v107_v52, 2  ;;  %v56_v56 = vpop.permute.xlu0 %55 }
  0x8b   :  { %v1179_v59 = vpop.permute.xlu2 %96  ;;  %v57_v2 = vrot.slane %v56_v56, 2 }
  0x8c   :  { %v110_v61 = vsel %vm109_vm2, %v107_v52, %v108_v55  ;;  %v657_v52 = vstv %s1219_s21 }
  0x8d   :  { %v112_v63 = vadd.f32 %v110_v61, %v81_v50  ;;  %v58_v10 = vsel %vm47_vm0, %v56_v56, %v57_v2  ;;  %v98_v50 = vrot.slane %v1179_v59, 2  ;;  %v38_v56 = vmul.f32 %v37_v49, %v1041_v0 }
  0x8e   :  { %v60_v21 = vadd.f32 %v58_v10, %v34_v7  ;;  %v658_v61 = vmul.f32 %v1130_v18, %v657_v52  ;;  %v738_v2 = vmul.f32 %v1130_v18, %v737_v44  ;;  %v295_v52 = vstv %s1287_s8 }
  0x8f   :  { %v143_v5 = vadd.f32 %v141_v4, %v112_v63  ;;  %476 = vrot.lane.b32.xlu1 %v474_v58, %s1012_s7  ;;  %v99_v63 = vsel %vm78_vm1, %v1179_v59, %v98_v50  ;;  %v777_v50 = vstv %s1291_s9 }
  0x90   :  { %650 = vrot.lane.b32.xlu0 %v648_v62, %s1009_s26 }
  0x91   :  { %v200_v11 = vpop.permute.xlu1 %199  ;;  %v174_v12 = vadd.f32 %v172_v6, %v143_v5  ;;  %570 = vrot.lane.b32.xlu2 %v568_v3, %s1008_s24  ;;  %v291_v3 = vstv %s1232_s25  ;;  %v768_v6 = vmul.f32 %v1130_v18, %v767_v57 }
  0x92   :  { %v201_v14 = vrot.slane %v200_v11, 2  ;;  %v87_v15 = vpop.permute.xlu0 %86  ;;  %v292_v9 = vmul.f32 %v1075_v31, %v291_v3 }
  0x93   :  { %v88_v17 = vrot.slane %v87_v15, 2  ;;  %v1206_v20 = vpop.permute.xlu2 %127 }
  0x94   :  { %v203_v22 = vsel %vm202_vm5, %v200_v11, %v201_v14  ;;  %v129_v58 = vrot.slane %v1206_v20, 2  ;;  %v687_v11 = vstv %s1243_s27  ;;  %v577_v14 = vstv %s1247_s28 }
  0x95   :  { %v205_v25 = vadd.f32 %v203_v22, %v174_v12  ;;  %v89_v26 = vsel %vm78_vm1, %v87_v15, %v88_v17 }
  0x96   :  { %v91_v28 = vadd.f32 %v89_v26, %v60_v21  ;;  %v130_v8 = vsel %vm109_vm2, %v1206_v20, %v129_v58  ;;  %v778_v58 = vmul.f32 %v1130_v18, %v777_v50 }
  0x97   :  { %506 = vrot.lane.b32.xlu1 %v504_v19, %s1013_s11  ;;  %v607_v19 = vstv %s1251_s2 }
  0x98   :  { %680 = vrot.lane.b32.xlu0 %v678_v23, %s1011_s4  ;;  %v122_v29 = vadd.f32 %v120_v24, %v91_v28  ;;  %v688_v23 = vmul.f32 %v1130_v18, %v687_v11  ;;  %v608_v32 = vmul.f32 %v1130_v18, %v607_v19 }
  0x99   :  { %v149_v30 = vpop.permute.xlu1 %148  ;;  %600 = vrot.lane.b32.xlu2 %v598_v27, %s1007_s0  ;;  %v578_v27 = vmul.f32 %v1130_v18, %v577_v14  ;;  %v787_v14 = vstv %s1316_s14 }
  0x9a   :  { %v150_v35 = vrot.slane %v149_v30, 2  ;;  %v231_v36 = vpop.permute.xlu0 %230 }
  0x9b   :  { %v232_v38 = vrot.slane %v231_v36, 2  ;;  %v159_v40 = vpop.permute.xlu2 %158 }
  0x9c   :  { %v151_v41 = vsel %vm140_vm3, %v149_v30, %v150_v35  ;;  %v160_v0 = vrot.slane %v159_v40, 2 }
  0x9d   :  { %v153_v45 = vadd.f32 %v151_v41, %v122_v29  ;;  %v234_v46 = vsel %vm233_vm7, %v231_v36, %v232_v38  ;;  %v717_v36 = vstv %s1272_s5  ;;  %v638_v41 = vmul.f32 %v1130_v18, %v637_v34 }
  0x9e   :  { %v236_v48 = vadd.f32 %v234_v46, %v205_v25  ;;  %v161_v12 = vsel %vm140_vm3, %v159_v40, %v160_v0 }
  0x9f   :  { %536 = vrot.lane.b32.xlu1 %v534_v39, %s1014_s13  ;;  %v747_v39 = vstv %s1276_s6 }
  0xa0   :  { %v267_v51 = vadd.f32 %v265_v43, %v236_v48  ;;  %710 = vrot.lane.b32.xlu0 %v708_v42, %s1012_s7  ;;  %v748_v48 = vmul.f32 %v1130_v18, %v747_v39 }
  0xa1   :  { %v180_v53 = vpop.permute.xlu1 %179  ;;  %630 = vrot.lane.b32.xlu2 %v628_v47, %s1010_s29 }
  0xa2   :  { %v181_v54 = vrot.slane %v180_v53, 2  ;;  %v66_v55 = vpop.permute.xlu0 %65  ;;  %v293_v21 = vadd.f32 %v292_v9, %v267_v51 }
  0xa3   :  { %v67_v60 = vrot.slane %v66_v55, 2  ;;  %v190_v62 = vpop.permute.xlu2 %189 }
  0xa4   :  { %v182_v1 = vsel %vm171_vm4, %v180_v53, %v181_v54  ;;  %v191_v59 = vrot.slane %v190_v62, 2  ;;  %v667_v53 = vstv %s1294_s10 }
  0xa5   :  { %v184_v4 = vadd.f32 %v182_v1, %v153_v45  ;;  %v68_v5 = vsel %vm47_vm0, %v66_v55, %v67_v60  ;;  %v718_v45 = vmul.f32 %v1130_v18, %v717_v36  ;;  %v697_v55 = vstv %s1298_s12 }
  0xa6   :  { %v70_v7 = vadd.f32 %v68_v5, %v38_v56  ;;  %v192_v20 = vsel %vm171_vm4, %v190_v62, %v191_v59  ;;  %v296_v62 = vmul.f32 %v1075_v31, %v295_v52  ;;  %v698_v0 = vmul.f32 %v1130_v18, %v697_v55 }
  0xa7   :  { %660 = vrot.lane.b32.xlu1 %v658_v61, %s1009_s26 }
  0xa8   :  { %v101_v10 = vadd.f32 %v99_v63, %v70_v7  ;;  %740 = vrot.lane.b32.xlu0 %v738_v2, %s1013_s11  ;;  %v668_v63 = vmul.f32 %v1130_v18, %v667_v53 }
  0xa9   :  { %v307_v13 = vpop.permute.xlu1 %306  ;;  %770 = vrot.lane.b32.xlu2 %v768_v6, %s1014_s13 }
  0xaa   :  { %v132_v15 = vadd.f32 %v130_v8, %v101_v10  ;;  %v308_v16 = vrot.slane %v307_v13, 2  ;;  %v211_v17 = vpop.permute.xlu0 %210 }
  0xab   :  { %v212_v22 = vrot.slane %v211_v17, 2  ;;  %v317_v24 = vpop.permute.xlu2 %316 }
  0xac   :  { %v163_v25 = vadd.f32 %v161_v12, %v132_v15  ;;  %v309_v26 = vsel %vm47_vm0, %v307_v13, %v308_v16  ;;  %v318_v56 = vrot.slane %v317_v24, 2 }
  0xad   :  { %v311_v28 = vadd.f32 %v309_v26, %v293_v21  ;;  %v213_v29 = vsel %vm202_vm5, %v211_v17, %v212_v22 }
  0xae   :  { %v1284_v33 = vadd.f32 %v192_v20, %v163_v25  ;;  %v215_v30 = vadd.f32 %v213_v29, %v184_v4  ;;  %v319_v5 = vsel %vm47_vm0, %v317_v24, %v318_v56  ;;  %v788_v25 = vmul.f32 %v1130_v18, %v787_v14 }
  0xaf   :  { %690 = vrot.lane.b32.xlu1 %v688_v23, %s1011_s4 }
  0xb0   :  { %580 = vrot.lane.b32.xlu0 %v578_v27, %s1008_s24  ;;  %s1312_s24 = sld [smem:[#allocation2 + $0x118]] }
  0xb1   :  { %v337_v35 = vpop.permute.xlu1 %336  ;;  %610 = vrot.lane.b32.xlu2 %v608_v32, %s1007_s0  ;;  %s1308_s0 = sld [smem:[#allocation2 + $0x119]] }
  0xb2   :  { %v338_v37 = vrot.slane %v337_v35, 2  ;;  %v242_v38 = vpop.permute.xlu0 %241 }
  0xb3   :  { %v243_v40 = vrot.slane %v242_v38, 2  ;;  %v347_v42 = vpop.permute.xlu2 %346 }
  0xb4   :  { %v339_v43 = vsel %vm78_vm1, %v337_v35, %v338_v37  ;;  %v348_v1 = vrot.slane %v347_v42, 2 }
  0xb5   :  { %v341_v46 = vadd.f32 %v339_v43, %v311_v28  ;;  %v244_v47 = vsel %vm233_vm7, %v242_v38, %v243_v40 }
  0xb6   :  { %v246_v49 = vadd.f32 %v244_v47, %v215_v30  ;;  %v349_v59 = vsel %vm78_vm1, %v347_v42, %v348_v1  ;;  %v727_v10 = vstv %s1312_s24 }
  0xb7   :  { %640 = vrot.lane.b32.xlu1 %v638_v41, %s1010_s29  ;;  %v757_v8 = vstv %s1308_s0  ;;  %v728_v21 = vmul.f32 %v1130_v18, %v727_v10  ;;  %s924_s29 = sld [smem:[#allocation2 + $0x109]] }
  0xb8   :  { %720 = vrot.lane.b32.xlu0 %v718_v45, %s1012_s7  ;;  %v758_v17 = vmul.f32 %v1130_v18, %v757_v8 }
  0xb9   :  { %v367_v51 = vpop.permute.xlu1 %366  ;;  %750 = vrot.lane.b32.xlu2 %v748_v48, %s1013_s11 }
  0xba   :  { %v368_v44 = vrot.slane %v367_v51, 2  ;;  %v273_v54 = vpop.permute.xlu0 %272 }
  0xbb   :  { %v274_v57 = vrot.slane %v273_v54, 2  ;;  %v377_v60 = vpop.permute.xlu2 %376 }
  0xbc   :  { %v369_v61 = vsel %vm109_vm2, %v367_v51, %v368_v44  ;;  %v378_v6 = vrot.slane %v377_v60, 2 }
  0xbd   :  { %v371_v2 = vadd.f32 %v369_v61, %v341_v46  ;;  %v275_v3 = vsel %vm264_vm6, %v273_v54, %v274_v57 }
  0xbe   :  { %v277_v4 = vadd.f32 %v275_v3, %v246_v49  ;;  %v379_v15 = vsel %vm109_vm2, %v377_v60, %v378_v6 }
  0xbf   :  { %780 = vrot.lane.b32.xlu1 %v778_v58, %s1014_s13 }
  0xc0   :  { %v297_v7 = vadd.f32 %v296_v62, %v277_v4  ;;  %670 = vrot.lane.b32.xlu0 %v668_v63, %s1009_s26  ;;  %s950_s26 = sld [smem:[#allocation2 + $0x12]] }
  0xc1   :  { %v221_v9 = vpop.permute.xlu1 %220  ;;  %700 = vrot.lane.b32.xlu2 %v698_v0, %s1011_s4  ;;  %s1368_s4 = sld [smem:[#allocation2 + $0x92]] }
  0xc2   :  { %v321_v11 = vadd.f32 %v319_v5, %v297_v7  ;;  %v222_v12 = vrot.slane %v221_v9, 2  ;;  %v397_v13 = vpop.permute.xlu0 %396 }
  0xc3   :  { %v398_v16 = vrot.slane %v397_v13, 2  ;;  %v517_v22 = vpop.permute.xlu2 %516 }
  0xc4   :  { %v351_v19 = vadd.f32 %v349_v59, %v321_v11  ;;  %v223_v20 = vsel %vm202_vm5, %v221_v9, %v222_v12  ;;  %v518_v0 = vrot.slane %v517_v22, 2  ;;  %v299_v11 = vstv %s924_s29 }
  0xc5   :  { %v225_v23 = vadd.f32 %v223_v20, %v1284_v33  ;;  %v399_v24 = vsel %vm140_vm3, %v397_v13, %v398_v16 }
  0xc6   :  { %v381_v26 = vadd.f32 %v379_v15, %v351_v19  ;;  %v401_v27 = vadd.f32 %v399_v24, %v371_v2  ;;  %v519_v7 = vsel %vm264_vm6, %v517_v22, %v518_v0  ;;  %v545_v8 = vstv %s950_s26 }
  0xc7   :  { %760 = vrot.lane.b32.xlu1 %v758_v17, %s1013_s11  ;;  %v546_v15 = vmul.f32 %v1130_v18, %v545_v8  ;;  %v300_v19 = vmul.f32 %v1075_v31, %v299_v11 }
  0xc8   :  { %730 = vrot.lane.b32.xlu0 %v728_v21, %s1012_s7 }
  0xc9   :  { %v252_v28 = vpop.permute.xlu1 %251  ;;  %790 = vrot.lane.b32.xlu2 %v788_v25, %s1014_s13 }
  0xca   :  { %v253_v29 = vrot.slane %v252_v28, 2  ;;  %v427_v32 = vpop.permute.xlu0 %426 }
  0xcb   :  { %v1343_v35 = vpop.permute.xlu2 %356  ;;  %v428_v57 = vrot.slane %v427_v32, 2 }
  0xcc   :  { %v254_v30 = vsel %vm233_vm7, %v252_v28, %v253_v29 }
  0xcd   :  { %v256_v34 = vadd.f32 %v254_v30, %v225_v23  ;;  %v429_v61 = vsel %vm171_vm4, %v427_v32, %v428_v57  ;;  %v358_v23 = vrot.slane %v1343_v35, 2 }
  0xce   :  { %v431_v3 = vadd.f32 %v429_v61, %v401_v27 }
  0xd1   :  { %v283_v33 = vpop.permute.xlu1 %282 }
  0xd2   :  { %v284_v36 = vrot.slane %v283_v33, 2  ;;  %v457_v37 = vpop.permute.xlu0 %456 }
  0xd3   :  { %v1346_v40 = vpop.permute.xlu2 %386  ;;  %v458_v58 = vrot.slane %v457_v37, 2 }
  0xd4   :  { %v285_v38 = vsel %vm264_vm6, %v283_v33, %v284_v36 }
  0xd5   :  { %v287_v39 = vadd.f32 %v285_v38, %v256_v34  ;;  %v459_v2 = vsel %vm202_vm5, %v457_v37, %v458_v58  ;;  %v388_v38 = vrot.slane %v1346_v40, 2 }
  0xd6   :  { %v461_v5 = vadd.f32 %v459_v2, %v431_v3 }
  0xd7   :  { %v301_v30 = vadd.f32 %v300_v19, %v287_v39  ;;  %v359_v39 = vsel %vm78_vm1, %v1343_v35, %v358_v23 }
  0xd9   :  { %v407_v41 = vpop.permute.xlu1 %406 }
  0xda   :  { %v408_v42 = vrot.slane %v407_v41, 2  ;;  %v487_v43 = vpop.permute.xlu0 %486 }
  0xdb   :  { %v1349_v48 = vpop.permute.xlu2 %416  ;;  %v488_v62 = vrot.slane %v487_v43, 2 }
  0xdc   :  { %v409_v45 = vsel %vm140_vm3, %v407_v41, %v408_v42  ;;  %v418_v2 = vrot.slane %v1349_v48, 2 }
  0xdd   :  { %v411_v46 = vadd.f32 %v409_v45, %v381_v26  ;;  %v489_v4 = vsel %vm233_vm7, %v487_v43, %v488_v62  ;;  %v796_v45 = vld [vmem:[%s1461_s1] sm:$0x7]  ;;  %v389_v62 = vsel %vm109_vm2, %v1346_v40, %v388_v38  ;;  %s1409_s1 = sld [smem:[#allocation2 + $0x112]] }
  0xde   :  { %v491_v6 = vadd.f32 %v489_v4, %v461_v5  ;;  %v800_v61 = vperm.slane %v796_v45, 1  ;;  %v799_v40 = vperm.slane %v796_v45, 0 }
  0xe0   :  { %v521_v13 = vadd.f32 %v519_v7, %v491_v6 }
  0xe1   :  { %v437_v47 = vpop.permute.xlu1 %436 }
  0xe2   :  { %v327_v49 = vpop.permute.xlu0 %326  ;;  %v438_v14 = vrot.slane %v437_v47, 2  ;;  %v547_v25 = vadd.f32 %v546_v15, %v521_v13  ;;  %v802_v13 = vrot.slane %v800_v61, 6 }
  0xe3   :  { %v1351_v52 = vpop.permute.xlu2 %446  ;;  %v328_v16 = vrot.slane %v327_v49, 2 }
  0xe4   :  { %v439_v24 = vsel %vm171_vm4, %v437_v47, %v438_v14  ;;  %v419_v14 = vsel %vm140_vm3, %v1349_v48, %v418_v2 }
  0xe5   :  { %v329_v27 = vsel %vm47_vm0, %v327_v49, %v328_v16  ;;  %v441_v41 = vadd.f32 %v439_v24, %v411_v46  ;;  %v448_v16 = vrot.slane %v1351_v52, 2 }
  0xe6   :  { %v331_v47 = vadd.f32 %v329_v27, %v301_v30 }
  0xe8   :  { %v361_v0 = vadd.f32 %v359_v39, %v331_v47 }
  0xe9   :  { %v561_v50 = vpop.permute.xlu1 %560 }
  0xea   :  { %v467_v51 = vpop.permute.xlu0 %466  ;;  %v562_v12 = vrot.slane %v561_v50, 2  ;;  %v391_v15 = vadd.f32 %v389_v62, %v361_v0 }
  0xeb   :  { %v1353_v54 = vpop.permute.xlu2 %570  ;;  %v468_v20 = vrot.slane %v467_v51, 2 }
  0xec   :  { %v563_v21 = vsel %vm47_vm0, %v561_v50, %v562_v12 }
  0xed   :  { %v565_v31 = vadd.f32 %v563_v21, %v547_v25  ;;  %v469_v34 = vsel %vm202_vm5, %v467_v51, %v468_v20 }
  0xee   :  { %v471_v51 = vadd.f32 %v469_v34, %v441_v41 }
  0xf1   :  { %v591_v53 = vpop.permute.xlu1 %590 }
  0xf2   :  { %v497_v44 = vpop.permute.xlu0 %496  ;;  %v592_v17 = vrot.slane %v591_v53, 2 }
  0xf3   :  { %v1355_v60 = vpop.permute.xlu2 %600  ;;  %v498_v26 = vrot.slane %v497_v44, 2 }
  0xf4   :  { %v593_v28 = vsel %vm78_vm1, %v591_v53, %v592_v17  ;;  %v549_v53 = vstv %s1368_s4  ;;  %v602_v25 = vrot.slane %v1355_v60, 2 }
  0xf5   :  { %v595_v49 = vadd.f32 %v593_v28, %v565_v31  ;;  %v499_v50 = vsel %vm233_vm7, %v497_v44, %v498_v26  ;;  %v572_v44 = vrot.slane %v1353_v54, 2  ;;  %v550_v4 = vmul.f32 %v1130_v18, %v549_v53 }
  0xf6   :  { %v501_v3 = vadd.f32 %v499_v50, %v471_v51  ;;  %v805_v26 = vsel %vm804_vm8, %v799_v40, %v802_v13 }
  0xf7   :  { %v573_v17 = vsel %vm47_vm0, %v1353_v54, %v572_v44  ;;  %v421_v54 = vadd.f32 %v419_v14, %v391_v15 }
  0xf9   :  { %v621_v55 = vpop.permute.xlu1 %620 }
  0xfa   :  { %v527_v56 = vpop.permute.xlu0 %526  ;;  %v622_v22 = vrot.slane %v621_v55, 2 }
  0xfb   :  { %v1365_v9 = vpop.permute.xlu2 %630  ;;  %v528_v33 = vrot.slane %v527_v56, 2 }
  0xfc   :  { %v623_v42 = vsel %vm109_vm2, %v621_v55, %v622_v22 }
  0xfd   :  { %v625_v46 = vadd.f32 %v623_v42, %v595_v49  ;;  %v529_v55 = vsel %vm264_vm6, %v527_v56, %v528_v33  ;;  %v801_v56 = vperm.slane %v796_v45, 2 }
  0xff   :  { %v803_v23 = vrot.slane %v801_v56, 4 }
 0x101   :  { %v1358_v63 = vpop.permute.xlu1 %476  ;;  %v1414_v34 = vsel %vm806_vm9, %v805_v26, %v803_v23 }
 0x102   :  { %v651_v1 = vpop.permute.xlu0 %650  ;;  %v478_v27 = vrot.slane %v1358_v63, 2 }
 0x103   :  { %v652_v29 = vrot.slane %v651_v1, 2  ;;  %v771_v37 = vpop.permute.xlu2 %770 }
 0x104   :  { %v772_v8 = vrot.slane %v771_v37, 2  ;;  %v479_v42 = vsel %vm202_vm5, %v1358_v63, %v478_v27 }
 0x105   :  { %v653_v57 = vsel %vm140_vm3, %v651_v1, %v652_v29  ;;  %v531_v1 = vadd.f32 %v529_v55, %v501_v3  ;;  %v449_v29 = vsel %vm171_vm4, %v1351_v52, %v448_v16 }
 0x106   :  { %v655_v5 = vadd.f32 %v653_v57, %v625_v46  ;;  %v773_v24 = vsel %vm264_vm6, %v771_v37, %v772_v8  ;;  %v632_v37 = vrot.slane %v1365_v9, 2  ;;  %v451_v52 = vadd.f32 %v449_v29, %v421_v54 }
 0x107   :  { %v551_v21 = vadd.f32 %v550_v4, %v531_v1  ;;  %v553_v57 = vstv %s1409_s1 }
 0x108   :  { %v481_v50 = vadd.f32 %v479_v42, %v451_v52  ;;  %v554_v3 = vmul.f32 %v1130_v18, %v553_v57 }
 0x109   :  { %v1363_v59 = vpop.permute.xlu1 %506  ;;  %v575_v30 = vadd.f32 %v573_v17, %v551_v21 }
 0x10a   :  { %v681_v10 = vpop.permute.xlu0 %680  ;;  %v508_v31 = vrot.slane %v1363_v59, 2 }
 0x10b   :  { %v682_v43 = vrot.slane %v681_v10, 2  ;;  %v1402_v20 = vpop.permute.xlu2 %610 }
 0x10c   :  { %v509_v49 = vsel %vm233_vm7, %v1363_v59, %v508_v31  ;;  %v612_v44 = vrot.slane %v1402_v20, 2 }
 0x10d   :  { %v683_v35 = vsel %vm171_vm4, %v681_v10, %v682_v43 }
 0x10e   :  { %v685_v11 = vadd.f32 %v683_v35, %v655_v5  ;;  %v613_v17 = vsel %vm78_vm1, %v1402_v20, %v612_v44 }
 0x111   :  { %v1376_v32 = vpop.permute.xlu1 %536 }
 0x112   :  { %v711_v36 = vpop.permute.xlu0 %710  ;;  %v538_v43 = vrot.slane %v1376_v32, 2 }
 0x113   :  { %v712_v58 = vrot.slane %v711_v36, 2  ;;  %v751_v53 = vpop.permute.xlu2 %750 }
 0x114   :  { %v539_v63 = vsel %vm264_vm6, %v1376_v32, %v538_v43  ;;  %v752_v4 = vrot.slane %v751_v53, 2 }
 0x115   :  { %v713_v6 = vsel %vm202_vm5, %v711_v36, %v712_v58  ;;  %v603_v36 = vsel %vm78_vm1, %v1355_v60, %v602_v25  ;;  %v633_v60 = vsel %vm109_vm2, %v1365_v9, %v632_v37  ;;  %v511_v58 = vadd.f32 %v509_v49, %v481_v50 }
 0x116   :  { %v715_v19 = vadd.f32 %v713_v6, %v685_v11  ;;  %v605_v47 = vadd.f32 %v603_v36, %v575_v30 }
 0x117   :  { %v541_v2 = vadd.f32 %v539_v63, %v511_v58 }
 0x118   :  { %v635_v55 = vadd.f32 %v633_v60, %v605_v47 }
 0x119   :  { %v661_v7 = vpop.permute.xlu1 %660  ;;  %v555_v56 = vadd.f32 %v554_v3, %v541_v2 }
 0x11a   :  { %v741_v12 = vpop.permute.xlu0 %740  ;;  %v662_v45 = vrot.slane %v661_v7, 2 }
 0x11b   :  { %v742_v10 = vrot.slane %v741_v12, 2  ;;  %v701_v16 = vpop.permute.xlu2 %700 }
 0x11c   :  { %v663_v46 = vsel %vm140_vm3, %v661_v7, %v662_v45  ;;  %v702_v29 = vrot.slane %v701_v16, 2 }
 0x11d   :  { %v743_v22 = vsel %vm233_vm7, %v741_v12, %v742_v10  ;;  %v665_v35 = vadd.f32 %v663_v46, %v635_v55  ;;  %v753_v10 = vsel %vm233_vm7, %v751_v53, %v752_v4 }
 0x11e   :  { %v745_v48 = vadd.f32 %v743_v22, %v715_v19  ;;  %v703_v36 = vsel %vm171_vm4, %v701_v16, %v702_v29 }
 0x120   :  { %v775_v28 = vadd.f32 %v773_v24, %v745_v48 }
 0x121   :  { %v691_v33 = vpop.permute.xlu1 %690 }
 0x122   :  { %v797_v38 = vmax.f32 %v775_v28, 0.0  ;;  %v581_v41 = vpop.permute.xlu0 %580  ;;  %v692_v51 = vrot.slane %v691_v33, 2 }
 0x123   :  { %v582_v61 = vrot.slane %v581_v41, 2 }
 0x124   :  { %v809_v39 = vmul.f32 %v1414_v34, %v797_v38  ;;  %v693_v59 = vsel %vm171_vm4, %v691_v33, %v692_v51 }
 0x125   :  { %v695_v32 = vadd.f32 %v693_v59, %v665_v35  ;;  %v583_v5 = vsel %vm47_vm0, %v581_v41, %v582_v61  ;;  %v791_v41 = vpop.permute.xlu2 %790 }
 0x126   :  { %811 = vst [vmem:[#allocation1] ss:$4 sm:$0xff] %v809_v39  ;;  %v585_v14 = vadd.f32 %v583_v5, %v555_v56  ;;  %v792_v39 = vrot.slane %v791_v41, 2 }
 0x128   :  { %v615_v26 = vadd.f32 %v613_v17, %v585_v14  ;;  %v793_v50 = vsel %vm264_vm6, %v791_v41, %v792_v39 }
 0x129   :  { %v641_v62 = vpop.permute.xlu1 %640 }
 0x12a   :  { %v721_v9 = vpop.permute.xlu0 %720  ;;  %v642_v12 = vrot.slane %v641_v62, 2 }
 0x12b   :  { %v722_v0 = vrot.slane %v721_v9, 2 }
 0x12c   :  { %v643_v24 = vsel %vm109_vm2, %v641_v62, %v642_v12 }
 0x12d   :  { %v723_v1 = vsel %vm202_vm5, %v721_v9, %v722_v0  ;;  %v812_v6 = vld.sshfl [vmem:[#allocation1] sm:$0xff pattern:$0x73625140]  ;;  %v813_v7 = vld.sshfl [vmem:[#allocation1 + $0x8] sm:$0xff pattern:$0x73625140]  ;;  %v645_v30 = vadd.f32 %v643_v24, %v615_v26 }
 0x12e   :  { %v814_v8 = vld.sshfl [vmem:[#allocation1 + $0x10] sm:$0xff pattern:$0x73625140]  ;;  %v818_v11 = vsel %vm804_vm8, %v812_v6, 0.0  ;;  %v819_v18 = vsel %vm804_vm8, %v813_v7, 0.0  ;;  %v725_v40 = vadd.f32 %v723_v1, %v695_v32 }
 0x12f   :  { %v820_v13 = vadd.f32 %v819_v18, %v818_v11  ;;  %v822_v15 = vsel %vm821_vm10, %v814_v8, 0.0 }
 0x130   :  { %v755_v25 = vadd.f32 %v753_v10, %v725_v40 }
 0x131   :  { %v781_v19 = vpop.permute.xlu1 %780  ;;  %v823_v21 = vadd.f32 %v822_v15, %v820_v13 }
 0x132   :  { %v782_v22 = vrot.slane %v781_v19, 2  ;;  %v671_v23 = vpop.permute.xlu0 %670 }
 0x133   :  { %v672_v48 = vrot.slane %v671_v23, 2  ;;  %824 = vadd.xlane.f32.xlu0 %v823_v21 }
 0x134   :  { %v783_v27 = vsel %vm264_vm6, %v781_v19, %v782_v22 }
 0x135   :  { %v785_v54 = vadd.f32 %v783_v27, %v755_v25  ;;  %v673_v28 = vsel %vm140_vm3, %v671_v23, %v672_v48  ;;  %v884_v25 = vlaneseq }
 0x136   :  { %v675_v33 = vadd.f32 %v673_v28, %v645_v30 }
 0x137   :  { %v834_v31 = vmax.f32 %v785_v54, 0.0  ;;  %v885_v48 = vand.u32 127, %v884_v25 }
 0x138   :  { %v705_v52 = vadd.f32 %v703_v36, %v675_v33 }
 0x139   :  { %v835_v20 = vmul.f32 %v834_v31, %v1414_v34  ;;  %v761_v37 = vpop.permute.xlu1 %760  ;;  %vm886_vm11 = vcmp.eq.s32.totalorder %v885_v48, 0 }
 0x13a   :  { %v731_v38 = vpop.permute.xlu0 %730  ;;  %v762_v42 = vrot.slane %v761_v37, 2 }
 0x13b   :  { %837 = vst [vmem:[#allocation1] ss:$4 sm:$0xff] %v835_v20  ;;  %v732_v43 = vrot.slane %v731_v38, 2 }
 0x13c   :  { %v763_v49 = vsel %vm233_vm7, %v761_v37, %v762_v42 }
 0x13d   :  { %v733_v45 = vsel %vm202_vm5, %v731_v38, %v732_v43 }
 0x13e   :  { %v735_v47 = vadd.f32 %v733_v45, %v705_v52 }
 0x140   :  { %v765_v60 = vadd.f32 %v763_v49, %v735_v47 }
 0x142   :  { %v795_v51 = vadd.f32 %v793_v50, %v765_v60  ;;  %v838_v53 = vld.sshfl [vmem:[#allocation1] sm:$0xff pattern:$0x73625140]  ;;  %v839_v63 = vld.sshfl [vmem:[#allocation1 + $0x8] sm:$0xff pattern:$0x73625140] }
 0x143   :  { %v840_v57 = vld.sshfl [vmem:[#allocation1 + $0x10] sm:$0xff pattern:$0x73625140]  ;;  %v844_v58 = vsel %vm804_vm8, %v838_v53, 0.0  ;;  %v845_v46 = vsel %vm804_vm8, %v839_v63, 0.0 }
 0x144   :  { %v859_v55 = vmax.f32 %v795_v51, 0.0  ;;  %v846_v61 = vadd.f32 %v845_v46, %v844_v58  ;;  %v847_v62 = vsel %vm821_vm10, %v840_v57, 0.0 }
 0x146   :  { %v860_v2 = vmul.f32 %v859_v55, %v1414_v34  ;;  %v848_v59 = vadd.f32 %v847_v62, %v846_v61 }
 0x148   :  { %862 = vst [vmem:[#allocation1] ss:$4 sm:$0xff] %v860_v2  ;;  %849 = vadd.xlane.f32.xlu1 %v848_v59 }
 0x14f   :  { %v863_v3 = vld.sshfl [vmem:[#allocation1] sm:$0xff pattern:$0x73625140]  ;;  %v864_v9 = vld.sshfl [vmem:[#allocation1 + $0x8] sm:$0xff pattern:$0x73625140] }
 0x150   :  { %v865_v35 = vld.sshfl [vmem:[#allocation1 + $0x10] sm:$0xff pattern:$0x73625140]  ;;  %v869_v0 = vsel %vm804_vm8, %v863_v3, 0.0  ;;  %v870_v44 = vsel %vm804_vm8, %v864_v9, 0.0 }
 0x151   :  { %v871_v4 = vadd.f32 %v870_v44, %v869_v0  ;;  %v872_v32 = vsel %vm821_vm10, %v865_v35, 0.0 }
 0x153   :  { %v873_v5 = vadd.f32 %v872_v32, %v871_v4 }
 0x155   :  { %874 = vadd.xlane.f32.xlu2 %v873_v5 }
 0x1a6   :  { %v825_v1 = vpop.xlane.xlu0 %824 }
 0x1a7   :  { %v826_v6 = vrot.slane %v825_v1, 4 }
 0x1a9   :  { %v827_v7 = vadd.f32 %v826_v6, %v825_v1 }
 0x1ab   :  { %v828_v56 = vrot.slane %v827_v7, 2 }
 0x1ad   :  { %v829_v34 = vadd.f32 %v828_v56, %v827_v7 }
 0x1af   :  { %v830_v8 = vrot.slane %v829_v34, 1 }
 0x1b1   :  { %v831_v11 = vadd.f32 %v830_v8, %v829_v34 }
 0x1b3   :  { %977 = vpush %v831_v11 }
 0x1bb   :  { %v850_v18 = vpop.xlane.xlu1 %849 }
 0x1bc   :  { %v851_v12 = vrot.slane %v850_v18, 4 }
 0x1be   :  { %v852_v40 = vadd.f32 %v851_v12, %v850_v18 }
 0x1c0   :  { %v853_v13 = vrot.slane %v852_v40, 2 }
 0x1c2   :  { %v854_v14 = vadd.f32 %v853_v13, %v852_v40 }
 0x1c4   :  { %v855_v10 = vrot.slane %v854_v14, 1 }
 0x1c6   :  { %v856_v15 = vadd.f32 %v855_v10, %v854_v14 }
 0x1c8   :  { %v875_v16 = vpop.xlane.xlu2 %874  ;;  %979 = vpush %v856_v15 }
 0x1c9   :  { %v876_v17 = vrot.slane %v875_v16, 4 }
 0x1cb   :  { %v877_v19 = vadd.f32 %v876_v17, %v875_v16 }
 0x1cd   :  { %v878_v21 = vrot.slane %v877_v19, 2 }
 0x1cf   :  { %v879_v22 = vadd.f32 %v878_v21, %v877_v19 }
 0x1d1   :  { %v880_v23 = vrot.slane %v879_v22, 1 }
 0x1d3   :  { %v881_v24 = vadd.f32 %v880_v23, %v879_v22 }
 0x1d5   :  { %981 = vpush %v881_v24 }
 0x1e4   :  { %s978_s13 = spop %977 }
 0x1f9   :  { %s980_s15 = spop %979 }
 0x1fa   :  { %s858_s16 = sadd.f32 %s980_s15, %s978_s13 }
 0x206   :  { %s982_s17 = spop %981 }
 0x207   :  { %s883_s18 = sadd.f32 %s982_s17, %s858_s16 }
 0x209   :  { %v887_v26 = vstv %s883_s18 }
 0x20a   :  { %v888_v27 = vsel %vm886_vm11, %v887_v26, 0.0 }
 0x20b   :  { %889 = vst [vmem:[%s1463_s3] sm:$0x1] %v888_v27 }
 0x20c   :  { %894 = vsyncpa [#allocation3], 1 }

</bundles_post_ra>
